<compile_context>
chip_gen: v5e
topology: v5e:2x2
jax: 0.10.0
libtpu: 0.0.40
codegen_flags: <defaults>
</compile_context>

<pallas_src>
import functools

import jax
import jax.numpy as jnp
import numpy as np
from jax.experimental import pallas as pl
from jax.experimental.pallas import tpu as pltpu


# -------------------------------------------------------------------------
# Pallas kernel: whole 2-layer LSTM recurrence + linear head, ONE invocation.
# All operands are full-array VMEM refs (total footprint < 100 KB).
# -------------------------------------------------------------------------
def _lstm_head_kernel(x_ref,        # (S*B, I)   time-major, flattened
                      wcat_ref,     # (H, 8H)    [whh1 | wih2], g-cols pre-scaled
                      slab_ref,     # (I+2H+8, 4H) [wih1; whh2; wl; b1,b2,bl,pad]
                      out_ref,      # (B, 4H)    lane-dense; cols >= O are zero
                      *, seq_len, batch, input_dim, hidden):
    H = hidden
    G = 4 * H                       # 128 lanes; gate blocks i, f, g, o
    I = input_dim

    # Static, sublane-aligned row offsets into the packed weight slab.
    r_wih1 = 0
    r_whh2 = I
    r_wl = I + H
    r_b = I + 2 * H

    wih1 = slab_ref[r_wih1:r_wih1 + I, :]       # (I, 4H)
    whh2 = slab_ref[r_whh2:r_whh2 + H, :]       # (H, 4H)
    wl = slab_ref[r_wl:r_wl + H, :]             # (H, 4H) head weight, lane-padded
    b1 = slab_ref[r_b + 0:r_b + 1, :]           # (1, 4H)
    b2 = slab_ref[r_b + 1:r_b + 2, :]           # (1, 4H)
    bl = slab_ref[r_b + 2:r_b + 3, :]           # (1, 4H) head bias, lane-padded

    wcat = wcat_ref[...]                        # (H, 8H)

    # Hoisted layer-1 input projection for every time step, bias folded in:
    # (S*B, 4H) = (64, 128), computed once.
    xp1 = jnp.dot(x_ref[...], wih1, preferred_element_type=jnp.float32) + b1

    # Hoisted single broadcast of the layer-2 bias (JAX does not CSE broadcasts).
    b2b = jnp.broadcast_to(b2, (batch, G))

    def cell(pre, c):
        # One EUP sigmoid over all 4H lanes.  The g pre-activation was doubled
        # at pack time, so tanh(g) = 2*sigmoid(2g) - 1 is a cheap VPU fixup.
        s = jax.nn.sigmoid(pre)
        i_g = s[:, 0 * H:1 * H]
        f_g = s[:, 1 * H:2 * H]
        g_g = 2.0 * s[:, 2 * H:3 * H] - 1.0
        o_g = s[:, 3 * H:4 * H]
        c_new = f_g * c + i_g * g_g
        h_new = o_g * jnp.tanh(c_new)
        return h_new, c_new

    zeros = jnp.zeros((batch, H), jnp.float32)

    # Wave 0: layer-1 step 0 (h1_{-1} = 0 -> no hidden-state matmul needed).
    h1, c1 = cell(xp1[0:batch, :], zeros)
    h2, c2 = zeros, zeros

    # Waves 1..S-1: layer-2 step (w-1) and layer-1 step w are data-independent;
    # one (B,H)@(H,8H) matmul on the previous wave's h1 feeds both halves
    # (split at the lane-128 vreg boundary).
    for w in range(1, seq_len):
        both = jnp.dot(h1, wcat, preferred_element_type=jnp.float32)   # (B, 8H)
        pre2 = (both[:, G:2 * G]
                + jnp.dot(h2, whh2, preferred_element_type=jnp.float32)
                + b2b)
        pre1 = xp1[w * batch:(w + 1) * batch, :] + both[:, 0:G]
        h2, c2 = cell(pre2, c2)
        h1, c1 = cell(pre1, c1)

    # Final wave: layer-2 step S-1.
    both = jnp.dot(h1, wcat, preferred_element_type=jnp.float32)
    pre2 = (both[:, G:2 * G]
            + jnp.dot(h2, whh2, preferred_element_type=jnp.float32)
            + b2b)
    h2, c2 = cell(pre2, c2)

    # Linear head on h_n[-1] (= h2); output stays lane-dense, padded cols = 0.
    out_ref[...] = (jnp.dot(h2, wl, preferred_element_type=jnp.float32)
                    + bl).astype(out_ref.dtype)


# -------------------------------------------------------------------------
# Jitted forward wrapper
# -------------------------------------------------------------------------
@functools.partial(jax.jit, static_argnames=("output_dim",))
def asl_lstm_forward(x_bsi, wcat, slab, *, output_dim):
    """x_bsi: (batch, seq, input_dim) — batch_first like the PyTorch module."""
    B, S, I = x_bsi.shape
    H = wcat.shape[0]
    G = 4 * H

    # pad batch to the 8-sublane minimum; extra rows compute garbage & are dropped
    B_pad = max(8, -(-B // 8) * 8)
    x = jnp.transpose(x_bsi.astype(jnp.float32), (1, 0, 2))      # (S, B, I)
    if B_pad != B:
        x = jnp.pad(x, ((0, 0), (0, B_pad - B), (0, 0)))
    x_flat = x.reshape(S * B_pad, I)                             # row t*B_pad + b

    kernel = functools.partial(_lstm_head_kernel, seq_len=S, batch=B_pad,
                               input_dim=I, hidden=H)
    vmem = pl.BlockSpec(memory_space=pltpu.MemorySpace.VMEM)
    out = pl.pallas_call(
        kernel,
        out_shape=jax.ShapeDtypeStruct((B_pad, G), jnp.float32),
        in_specs=[vmem, vmem, vmem],
        out_specs=vmem,
    )(x_flat, wcat, slab)
    # Note: no grid -> one TensorCore; a parallel batch grid only pays off on
    # v7x at real batch sizes (B >> 8), not at B=2.
    return out[:B, :output_dim]


# -------------------------------------------------------------------------
# PyTorch-style parameters (uniform(-1/sqrt(H), 1/sqrt(H))), torch layout:
# w_ih (4H, in), w_hh (4H, H), b_ih (4H,), b_hh (4H,), gates in order i,f,g,o.
# -------------------------------------------------------------------------
def make_params(key, input_dim, hidden_dim, output_dim):
    H = hidden_dim
    k = 1.0 / np.sqrt(H)
    keys = jax.random.split(key, 10)

    def u(kk, shape):
        return jax.random.uniform(kk, shape, jnp.float32, -k, k)

    w_ih1 = u(keys[0], (4 * H, input_dim))
    w_hh1 = u(keys[1], (4 * H, H))
    b_ih1 = u(keys[2], (4 * H,))
    b_hh1 = u(keys[3], (4 * H,))
    w_ih2 = u(keys[4], (4 * H, H))
    w_hh2 = u(keys[5], (4 * H, H))
    b_ih2 = u(keys[6], (4 * H,))
    b_hh2 = u(keys[7], (4 * H,))
    w_lin = u(keys[8], (output_dim, H))
    b_lin = u(keys[9], (output_dim,))
    return (w_ih1, w_hh1, b_ih1, b_hh1,
            w_ih2, w_hh2, b_ih2, b_hh2, w_lin, b_lin)


# -------------------------------------------------------------------------
# Pack torch-layout params into the two kernel slabs.
#   wcat: (H, 8H) = [whh1 | wih2]
#   slab: (I+2H+8, 4H) = [wih1; whh2; wl(pad); b1,b2,bl(pad),zeros]
# The g-gate columns (block 2H:3H) of every weight/bias are scaled by 2 so the
# kernel can use one full-lane sigmoid and recover tanh(g) = 2*sigmoid(2g) - 1.
# -------------------------------------------------------------------------
def pack_params(torch_params, input_dim, hidden_dim, output_dim):
    (w_ih1, w_hh1, b_ih1, b_hh1,
     w_ih2, w_hh2, b_ih2, b_hh2, w_lin, b_lin) = torch_params
    H = hidden_dim
    G = 4 * H
    assert G >= output_dim and input_dim % 8 == 0 and H % 8 == 0

    g_scale = jnp.concatenate([jnp.ones((2 * H,), jnp.float32),
                               jnp.full((H,), 2.0, jnp.float32),
                               jnp.ones((H,), jnp.float32)])

    def prep_w(w):                      # torch (4H, in) -> (in, 4H), g cols x2
        return jnp.transpose(w).astype(jnp.float32) * g_scale[None, :]

    def prep_b(b_ih, b_hh):             # -> (1, 4H), g entries x2
        return ((b_ih + b_hh).astype(jnp.float32) * g_scale)[None, :]

    wih1, whh1 = prep_w(w_ih1), prep_w(w_hh1)
    wih2, whh2 = prep_w(w_ih2), prep_w(w_hh2)
    b1, b2 = prep_b(b_ih1, b_hh1), prep_b(b_ih2, b_hh2)

    wcat = jnp.concatenate([whh1, wih2], axis=1)                 # (H, 8H)

    wl = jnp.zeros((H, G), jnp.float32).at[:, :output_dim].set(
        jnp.transpose(w_lin).astype(jnp.float32))
    bl = jnp.zeros((1, G), jnp.float32).at[:, :output_dim].set(
        b_lin.astype(jnp.float32)[None, :])

    bias_blk = jnp.zeros((8, G), jnp.float32)
    bias_blk = bias_blk.at[0:1].set(b1).at[1:2].set(b2).at[2:3].set(bl)

    slab = jnp.concatenate([wih1, whh2, wl, bias_blk], axis=0)   # (I+2H+8, 4H)
    return wcat, slab


# -------------------------------------------------------------------------
# Pure-JAX reference (lax.scan, standard LSTM formulation) for correctness.
# -------------------------------------------------------------------------
def reference_forward(x_bsi, torch_params):
    (w_ih1, w_hh1, b_ih1, b_hh1,
     w_ih2, w_hh2, b_ih2, b_hh2, w_lin, b_lin) = torch_params
    H = w_hh1.shape[1]
    x = jnp.transpose(x_bsi.astype(jnp.float32), (1, 0, 2))      # (S, B, I)
    B = x.shape[1]

    def cell(x_in, h, c, w_ih, w_hh, b_ih, b_hh):
        pre = x_in @ w_ih.T + h @ w_hh.T + b_ih + b_hh
        i = jax.nn.sigmoid(pre[:, :H])
        f = jax.nn.sigmoid(pre[:, H:2 * H])
        g = jnp.tanh(pre[:, 2 * H:3 * H])
        o = jax.nn.sigmoid(pre[:, 3 * H:])
        c = f * c + i * g
        h = o * jnp.tanh(c)
        return h, c

    def step(carry, x_t):
        h1, c1, h2, c2 = carry
        h1, c1 = cell(x_t, h1, c1, w_ih1, w_hh1, b_ih1, b_hh1)
        h2, c2 = cell(h1, h2, c2, w_ih2, w_hh2, b_ih2, b_hh2)
        return (h1, c1, h2, c2), None

    z = jnp.zeros((B, H), jnp.float32)
    (h1, c1, h2, c2), _ = jax.lax.scan(step, (z, z, z, z), x)
    return h2 @ w_lin.T + b_lin


if __name__ == "__main__":
    BATCH, SEQ, INPUT_DIM, HIDDEN_DIM, OUTPUT_DIM = 2, 8, 16, 32, 8

    key = jax.random.PRNGKey(0)
    kx, kp = jax.random.split(key)
    x = jax.random.normal(kx, (BATCH, SEQ, INPUT_DIM), jnp.float32)
    torch_params = make_params(kp, INPUT_DIM, HIDDEN_DIM, OUTPUT_DIM)
    wcat, slab = pack_params(torch_params, INPUT_DIM, HIDDEN_DIM, OUTPUT_DIM)

    out = jax.block_until_ready(
        asl_lstm_forward(x, wcat, slab, output_dim=OUTPUT_DIM))
    ref = jax.block_until_ready(reference_forward(x, torch_params))

    np.testing.assert_allclose(np.asarray(out), np.asarray(ref),
                               rtol=2e-4, atol=2e-4)
    assert out.shape == (BATCH, OUTPUT_DIM)
    print("KERNEL_OK")
</pallas_src>

<mosaic_0001>
module attributes {stable_mosaic.version = 11 : i64} {
  func.func @_lstm_head_kernel(%arg0: memref<64x16xf32, #tpu.memory_space<vmem>>, %arg1: memref<32x256xf32, #tpu.memory_space<vmem>>, %arg2: memref<88x128xf32, #tpu.memory_space<vmem>>, %arg3: memref<8x128xf32, #tpu.memory_space<vmem>>) attributes {dimension_semantics = [], scalar_prefetch = 0 : i64, scratch_operands = 0 : i64, tpu.core_type = #tpu.core_type<tc>} {
    %c0 = arith.constant 0 : index
    %c0_0 = arith.constant 0 : index
    %0 = vector.load %arg2[%c0, %c0_0] : memref<88x128xf32, #tpu.memory_space<vmem>>, vector<16x128xf32>
    %c16 = arith.constant 16 : index
    %c0_1 = arith.constant 0 : index
    %1 = vector.load %arg2[%c16, %c0_1] : memref<88x128xf32, #tpu.memory_space<vmem>>, vector<32x128xf32>
    %c48 = arith.constant 48 : index
    %c0_2 = arith.constant 0 : index
    %2 = vector.load %arg2[%c48, %c0_2] : memref<88x128xf32, #tpu.memory_space<vmem>>, vector<32x128xf32>
    %c80 = arith.constant 80 : index
    %c0_3 = arith.constant 0 : index
    %3 = vector.load %arg2[%c80, %c0_3] : memref<88x128xf32, #tpu.memory_space<vmem>>, vector<1x128xf32>
    %c81 = arith.constant 81 : index
    %c0_4 = arith.constant 0 : index
    %4 = vector.load %arg2[%c81, %c0_4] : memref<88x128xf32, #tpu.memory_space<vmem>>, vector<1x128xf32>
    %c82 = arith.constant 82 : index
    %c0_5 = arith.constant 0 : index
    %5 = vector.load %arg2[%c82, %c0_5] : memref<88x128xf32, #tpu.memory_space<vmem>>, vector<1x128xf32>
    %c0_6 = arith.constant 0 : index
    %c0_7 = arith.constant 0 : index
    %6 = vector.load %arg1[%c0_6, %c0_7] : memref<32x256xf32, #tpu.memory_space<vmem>>, vector<32x256xf32>
    %c0_8 = arith.constant 0 : index
    %c0_9 = arith.constant 0 : index
    %7 = vector.load %arg0[%c0_8, %c0_9] : memref<64x16xf32, #tpu.memory_space<vmem>>, vector<64x16xf32>
    %cst = arith.constant dense<0.000000e+00> : vector<64x128xf32>
    %8 = tpu.matmul %7, %0, %cst {dimension_numbers = #tpu.dot_dimension_numbers<[1], [0], [0], [1], [0, 0, 1, 1], [], []>} : vector<64x16xf32>, vector<16x128xf32>, vector<64x128xf32> -> vector<64x128xf32>
    %9 = vector.broadcast %3 : vector<1x128xf32> to vector<64x128xf32>
    %10 = arith.addf %8, %9 : vector<64x128xf32>
    %11 = vector.shape_cast %4 : vector<1x128xf32> to vector<1x128xf32>
    %12 = vector.broadcast %11 : vector<1x128xf32> to vector<8x128xf32>
    %cst_10 = arith.constant 0.000000e+00 : f32
    %13 = vector.broadcast %cst_10 : f32 to vector<8x32xf32>
    %14 = vector.extract_strided_slice %10 {offsets = [0, 0], sizes = [8, 128], strides = [1, 1]} : vector<64x128xf32> to vector<8x128xf32>
    %15 = arith.negf %14 : vector<8x128xf32>
    %16 = math.exp %15 : vector<8x128xf32>
    %cst_11 = arith.constant 1.000000e+00 : f32
    %17 = vector.broadcast %cst_11 : f32 to vector<8x128xf32>
    %18 = arith.addf %17, %16 : vector<8x128xf32>
    %19 = arith.divf %17, %18 : vector<8x128xf32>
    %20 = vector.extract_strided_slice %19 {offsets = [0, 0], sizes = [8, 32], strides = [1, 1]} : vector<8x128xf32> to vector<8x32xf32>
    %21 = vector.extract_strided_slice %19 {offsets = [0, 32], sizes = [8, 32], strides = [1, 1]} : vector<8x128xf32> to vector<8x32xf32>
    %22 = vector.extract_strided_slice %19 {offsets = [0, 64], sizes = [8, 32], strides = [1, 1]} : vector<8x128xf32> to vector<8x32xf32>
    %cst_12 = arith.constant 2.000000e+00 : f32
    %23 = vector.broadcast %cst_12 : f32 to vector<8x32xf32>
    %24 = arith.mulf %23, %22 : vector<8x32xf32>
    %cst_13 = arith.constant 1.000000e+00 : f32
    %25 = vector.broadcast %cst_13 : f32 to vector<8x32xf32>
    %26 = arith.subf %24, %25 : vector<8x32xf32>
    %27 = vector.extract_strided_slice %19 {offsets = [0, 96], sizes = [8, 32], strides = [1, 1]} : vector<8x128xf32> to vector<8x32xf32>
    %28 = arith.mulf %21, %13 : vector<8x32xf32>
    %29 = arith.mulf %20, %26 : vector<8x32xf32>
    %30 = arith.addf %28, %29 : vector<8x32xf32>
    %31 = math.tanh %30 : vector<8x32xf32>
    %32 = arith.mulf %27, %31 : vector<8x32xf32>
    %cst_14 = arith.constant dense<0.000000e+00> : vector<8x256xf32>
    %33 = tpu.matmul %32, %6, %cst_14 {dimension_numbers = #tpu.dot_dimension_numbers<[1], [0], [0], [1], [0, 0, 1, 1], [], []>} : vector<8x32xf32>, vector<32x256xf32>, vector<8x256xf32> -> vector<8x256xf32>
    %34 = vector.extract_strided_slice %33 {offsets = [0, 128], sizes = [8, 128], strides = [1, 1]} : vector<8x256xf32> to vector<8x128xf32>
    %cst_15 = arith.constant dense<0.000000e+00> : vector<8x128xf32>
    %35 = tpu.matmul %13, %1, %cst_15 {dimension_numbers = #tpu.dot_dimension_numbers<[1], [0], [0], [1], [0, 0, 1, 1], [], []>} : vector<8x32xf32>, vector<32x128xf32>, vector<8x128xf32> -> vector<8x128xf32>
    %36 = arith.addf %34, %35 : vector<8x128xf32>
    %37 = arith.addf %36, %12 : vector<8x128xf32>
    %38 = vector.extract_strided_slice %10 {offsets = [8, 0], sizes = [8, 128], strides = [1, 1]} : vector<64x128xf32> to vector<8x128xf32>
    %39 = vector.extract_strided_slice %33 {offsets = [0, 0], sizes = [8, 128], strides = [1, 1]} : vector<8x256xf32> to vector<8x128xf32>
    %40 = arith.addf %38, %39 : vector<8x128xf32>
    %41 = arith.negf %37 : vector<8x128xf32>
    %42 = math.exp %41 : vector<8x128xf32>
    %cst_16 = arith.constant 1.000000e+00 : f32
    %43 = vector.broadcast %cst_16 : f32 to vector<8x128xf32>
    %44 = arith.addf %43, %42 : vector<8x128xf32>
    %45 = arith.divf %43, %44 : vector<8x128xf32>
    %46 = vector.extract_strided_slice %45 {offsets = [0, 0], sizes = [8, 32], strides = [1, 1]} : vector<8x128xf32> to vector<8x32xf32>
    %47 = vector.extract_strided_slice %45 {offsets = [0, 32], sizes = [8, 32], strides = [1, 1]} : vector<8x128xf32> to vector<8x32xf32>
    %48 = vector.extract_strided_slice %45 {offsets = [0, 64], sizes = [8, 32], strides = [1, 1]} : vector<8x128xf32> to vector<8x32xf32>
    %cst_17 = arith.constant 2.000000e+00 : f32
    %49 = vector.broadcast %cst_17 : f32 to vector<8x32xf32>
    %50 = arith.mulf %49, %48 : vector<8x32xf32>
    %cst_18 = arith.constant 1.000000e+00 : f32
    %51 = vector.broadcast %cst_18 : f32 to vector<8x32xf32>
    %52 = arith.subf %50, %51 : vector<8x32xf32>
    %53 = vector.extract_strided_slice %45 {offsets = [0, 96], sizes = [8, 32], strides = [1, 1]} : vector<8x128xf32> to vector<8x32xf32>
    %54 = arith.mulf %47, %13 : vector<8x32xf32>
    %55 = arith.mulf %46, %52 : vector<8x32xf32>
    %56 = arith.addf %54, %55 : vector<8x32xf32>
    %57 = math.tanh %56 : vector<8x32xf32>
    %58 = arith.mulf %53, %57 : vector<8x32xf32>
    %59 = arith.negf %40 : vector<8x128xf32>
    %60 = math.exp %59 : vector<8x128xf32>
    %cst_19 = arith.constant 1.000000e+00 : f32
    %61 = vector.broadcast %cst_19 : f32 to vector<8x128xf32>
    %62 = arith.addf %61, %60 : vector<8x128xf32>
    %63 = arith.divf %61, %62 : vector<8x128xf32>
    %64 = vector.extract_strided_slice %63 {offsets = [0, 0], sizes = [8, 32], strides = [1, 1]} : vector<8x128xf32> to vector<8x32xf32>
    %65 = vector.extract_strided_slice %63 {offsets = [0, 32], sizes = [8, 32], strides = [1, 1]} : vector<8x128xf32> to vector<8x32xf32>
    %66 = vector.extract_strided_slice %63 {offsets = [0, 64], sizes = [8, 32], strides = [1, 1]} : vector<8x128xf32> to vector<8x32xf32>
    %cst_20 = arith.constant 2.000000e+00 : f32
    %67 = vector.broadcast %cst_20 : f32 to vector<8x32xf32>
    %68 = arith.mulf %67, %66 : vector<8x32xf32>
    %cst_21 = arith.constant 1.000000e+00 : f32
    %69 = vector.broadcast %cst_21 : f32 to vector<8x32xf32>
    %70 = arith.subf %68, %69 : vector<8x32xf32>
    %71 = vector.extract_strided_slice %63 {offsets = [0, 96], sizes = [8, 32], strides = [1, 1]} : vector<8x128xf32> to vector<8x32xf32>
    %72 = arith.mulf %65, %30 : vector<8x32xf32>
    %73 = arith.mulf %64, %70 : vector<8x32xf32>
    %74 = arith.addf %72, %73 : vector<8x32xf32>
    %75 = math.tanh %74 : vector<8x32xf32>
    %76 = arith.mulf %71, %75 : vector<8x32xf32>
    %cst_22 = arith.constant dense<0.000000e+00> : vector<8x256xf32>
    %77 = tpu.matmul %76, %6, %cst_22 {dimension_numbers = #tpu.dot_dimension_numbers<[1], [0], [0], [1], [0, 0, 1, 1], [], []>} : vector<8x32xf32>, vector<32x256xf32>, vector<8x256xf32> -> vector<8x256xf32>
    %78 = vector.extract_strided_slice %77 {offsets = [0, 128], sizes = [8, 128], strides = [1, 1]} : vector<8x256xf32> to vector<8x128xf32>
    %cst_23 = arith.constant dense<0.000000e+00> : vector<8x128xf32>
    %79 = tpu.matmul %58, %1, %cst_23 {dimension_numbers = #tpu.dot_dimension_numbers<[1], [0], [0], [1], [0, 0, 1, 1], [], []>} : vector<8x32xf32>, vector<32x128xf32>, vector<8x128xf32> -> vector<8x128xf32>
    %80 = arith.addf %78, %79 : vector<8x128xf32>
    %81 = arith.addf %80, %12 : vector<8x128xf32>
    %82 = vector.extract_strided_slice %10 {offsets = [16, 0], sizes = [8, 128], strides = [1, 1]} : vector<64x128xf32> to vector<8x128xf32>
    %83 = vector.extract_strided_slice %77 {offsets = [0, 0], sizes = [8, 128], strides = [1, 1]} : vector<8x256xf32> to vector<8x128xf32>
    %84 = arith.addf %82, %83 : vector<8x128xf32>
    %85 = arith.negf %81 : vector<8x128xf32>
    %86 = math.exp %85 : vector<8x128xf32>
    %cst_24 = arith.constant 1.000000e+00 : f32
    %87 = vector.broadcast %cst_24 : f32 to vector<8x128xf32>
    %88 = arith.addf %87, %86 : vector<8x128xf32>
    %89 = arith.divf %87, %88 : vector<8x128xf32>
    %90 = vector.extract_strided_slice %89 {offsets = [0, 0], sizes = [8, 32], strides = [1, 1]} : vector<8x128xf32> to vector<8x32xf32>
    %91 = vector.extract_strided_slice %89 {offsets = [0, 32], sizes = [8, 32], strides = [1, 1]} : vector<8x128xf32> to vector<8x32xf32>
    %92 = vector.extract_strided_slice %89 {offsets = [0, 64], sizes = [8, 32], strides = [1, 1]} : vector<8x128xf32> to vector<8x32xf32>
    %cst_25 = arith.constant 2.000000e+00 : f32
    %93 = vector.broadcast %cst_25 : f32 to vector<8x32xf32>
    %94 = arith.mulf %93, %92 : vector<8x32xf32>
    %cst_26 = arith.constant 1.000000e+00 : f32
    %95 = vector.broadcast %cst_26 : f32 to vector<8x32xf32>
    %96 = arith.subf %94, %95 : vector<8x32xf32>
    %97 = vector.extract_strided_slice %89 {offsets = [0, 96], sizes = [8, 32], strides = [1, 1]} : vector<8x128xf32> to vector<8x32xf32>
    %98 = arith.mulf %91, %56 : vector<8x32xf32>
    %99 = arith.mulf %90, %96 : vector<8x32xf32>
    %100 = arith.addf %98, %99 : vector<8x32xf32>
    %101 = math.tanh %100 : vector<8x32xf32>
    %102 = arith.mulf %97, %101 : vector<8x32xf32>
    %103 = arith.negf %84 : vector<8x128xf32>
    %104 = math.exp %103 : vector<8x128xf32>
    %cst_27 = arith.constant 1.000000e+00 : f32
    %105 = vector.broadcast %cst_27 : f32 to vector<8x128xf32>
    %106 = arith.addf %105, %104 : vector<8x128xf32>
    %107 = arith.divf %105, %106 : vector<8x128xf32>
    %108 = vector.extract_strided_slice %107 {offsets = [0, 0], sizes = [8, 32], strides = [1, 1]} : vector<8x128xf32> to vector<8x32xf32>
    %109 = vector.extract_strided_slice %107 {offsets = [0, 32], sizes = [8, 32], strides = [1, 1]} : vector<8x128xf32> to vector<8x32xf32>
    %110 = vector.extract_strided_slice %107 {offsets = [0, 64], sizes = [8, 32], strides = [1, 1]} : vector<8x128xf32> to vector<8x32xf32>
    %cst_28 = arith.constant 2.000000e+00 : f32
    %111 = vector.broadcast %cst_28 : f32 to vector<8x32xf32>
    %112 = arith.mulf %111, %110 : vector<8x32xf32>
    %cst_29 = arith.constant 1.000000e+00 : f32
    %113 = vector.broadcast %cst_29 : f32 to vector<8x32xf32>
    %114 = arith.subf %112, %113 : vector<8x32xf32>
    %115 = vector.extract_strided_slice %107 {offsets = [0, 96], sizes = [8, 32], strides = [1, 1]} : vector<8x128xf32> to vector<8x32xf32>
    %116 = arith.mulf %109, %74 : vector<8x32xf32>
    %117 = arith.mulf %108, %114 : vector<8x32xf32>
    %118 = arith.addf %116, %117 : vector<8x32xf32>
    %119 = math.tanh %118 : vector<8x32xf32>
    %120 = arith.mulf %115, %119 : vector<8x32xf32>
    %cst_30 = arith.constant dense<0.000000e+00> : vector<8x256xf32>
    %121 = tpu.matmul %120, %6, %cst_30 {dimension_numbers = #tpu.dot_dimension_numbers<[1], [0], [0], [1], [0, 0, 1, 1], [], []>} : vector<8x32xf32>, vector<32x256xf32>, vector<8x256xf32> -> vector<8x256xf32>
    %122 = vector.extract_strided_slice %121 {offsets = [0, 128], sizes = [8, 128], strides = [1, 1]} : vector<8x256xf32> to vector<8x128xf32>
    %cst_31 = arith.constant dense<0.000000e+00> : vector<8x128xf32>
    %123 = tpu.matmul %102, %1, %cst_31 {dimension_numbers = #tpu.dot_dimension_numbers<[1], [0], [0], [1], [0, 0, 1, 1], [], []>} : vector<8x32xf32>, vector<32x128xf32>, vector<8x128xf32> -> vector<8x128xf32>
    %124 = arith.addf %122, %123 : vector<8x128xf32>
    %125 = arith.addf %124, %12 : vector<8x128xf32>
    %126 = vector.extract_strided_slice %10 {offsets = [24, 0], sizes = [8, 128], strides = [1, 1]} : vector<64x128xf32> to vector<8x128xf32>
    %127 = vector.extract_strided_slice %121 {offsets = [0, 0], sizes = [8, 128], strides = [1, 1]} : vector<8x256xf32> to vector<8x128xf32>
    %128 = arith.addf %126, %127 : vector<8x128xf32>
    %129 = arith.negf %125 : vector<8x128xf32>
    %130 = math.exp %129 : vector<8x128xf32>
    %cst_32 = arith.constant 1.000000e+00 : f32
    %131 = vector.broadcast %cst_32 : f32 to vector<8x128xf32>
    %132 = arith.addf %131, %130 : vector<8x128xf32>
    %133 = arith.divf %131, %132 : vector<8x128xf32>
    %134 = vector.extract_strided_slice %133 {offsets = [0, 0], sizes = [8, 32], strides = [1, 1]} : vector<8x128xf32> to vector<8x32xf32>
    %135 = vector.extract_strided_slice %133 {offsets = [0, 32], sizes = [8, 32], strides = [1, 1]} : vector<8x128xf32> to vector<8x32xf32>
    %136 = vector.extract_strided_slice %133 {offsets = [0, 64], sizes = [8, 32], strides = [1, 1]} : vector<8x128xf32> to vector<8x32xf32>
    %cst_33 = arith.constant 2.000000e+00 : f32
    %137 = vector.broadcast %cst_33 : f32 to vector<8x32xf32>
    %138 = arith.mulf %137, %136 : vector<8x32xf32>
    %cst_34 = arith.constant 1.000000e+00 : f32
    %139 = vector.broadcast %cst_34 : f32 to vector<8x32xf32>
    %140 = arith.subf %138, %139 : vector<8x32xf32>
    %141 = vector.extract_strided_slice %133 {offsets = [0, 96], sizes = [8, 32], strides = [1, 1]} : vector<8x128xf32> to vector<8x32xf32>
    %142 = arith.mulf %135, %100 : vector<8x32xf32>
    %143 = arith.mulf %134, %140 : vector<8x32xf32>
    %144 = arith.addf %142, %143 : vector<8x32xf32>
    %145 = math.tanh %144 : vector<8x32xf32>
    %146 = arith.mulf %141, %145 : vector<8x32xf32>
    %147 = arith.negf %128 : vector<8x128xf32>
    %148 = math.exp %147 : vector<8x128xf32>
    %cst_35 = arith.constant 1.000000e+00 : f32
    %149 = vector.broadcast %cst_35 : f32 to vector<8x128xf32>
    %150 = arith.addf %149, %148 : vector<8x128xf32>
    %151 = arith.divf %149, %150 : vector<8x128xf32>
    %152 = vector.extract_strided_slice %151 {offsets = [0, 0], sizes = [8, 32], strides = [1, 1]} : vector<8x128xf32> to vector<8x32xf32>
    %153 = vector.extract_strided_slice %151 {offsets = [0, 32], sizes = [8, 32], strides = [1, 1]} : vector<8x128xf32> to vector<8x32xf32>
    %154 = vector.extract_strided_slice %151 {offsets = [0, 64], sizes = [8, 32], strides = [1, 1]} : vector<8x128xf32> to vector<8x32xf32>
    %cst_36 = arith.constant 2.000000e+00 : f32
    %155 = vector.broadcast %cst_36 : f32 to vector<8x32xf32>
    %156 = arith.mulf %155, %154 : vector<8x32xf32>
    %cst_37 = arith.constant 1.000000e+00 : f32
    %157 = vector.broadcast %cst_37 : f32 to vector<8x32xf32>
    %158 = arith.subf %156, %157 : vector<8x32xf32>
    %159 = vector.extract_strided_slice %151 {offsets = [0, 96], sizes = [8, 32], strides = [1, 1]} : vector<8x128xf32> to vector<8x32xf32>
    %160 = arith.mulf %153, %118 : vector<8x32xf32>
    %161 = arith.mulf %152, %158 : vector<8x32xf32>
    %162 = arith.addf %160, %161 : vector<8x32xf32>
    %163 = math.tanh %162 : vector<8x32xf32>
    %164 = arith.mulf %159, %163 : vector<8x32xf32>
    %cst_38 = arith.constant dense<0.000000e+00> : vector<8x256xf32>
    %165 = tpu.matmul %164, %6, %cst_38 {dimension_numbers = #tpu.dot_dimension_numbers<[1], [0], [0], [1], [0, 0, 1, 1], [], []>} : vector<8x32xf32>, vector<32x256xf32>, vector<8x256xf32> -> vector<8x256xf32>
    %166 = vector.extract_strided_slice %165 {offsets = [0, 128], sizes = [8, 128], strides = [1, 1]} : vector<8x256xf32> to vector<8x128xf32>
    %cst_39 = arith.constant dense<0.000000e+00> : vector<8x128xf32>
    %167 = tpu.matmul %146, %1, %cst_39 {dimension_numbers = #tpu.dot_dimension_numbers<[1], [0], [0], [1], [0, 0, 1, 1], [], []>} : vector<8x32xf32>, vector<32x128xf32>, vector<8x128xf32> -> vector<8x128xf32>
    %168 = arith.addf %166, %167 : vector<8x128xf32>
    %169 = arith.addf %168, %12 : vector<8x128xf32>
    %170 = vector.extract_strided_slice %10 {offsets = [32, 0], sizes = [8, 128], strides = [1, 1]} : vector<64x128xf32> to vector<8x128xf32>
    %171 = vector.extract_strided_slice %165 {offsets = [0, 0], sizes = [8, 128], strides = [1, 1]} : vector<8x256xf32> to vector<8x128xf32>
    %172 = arith.addf %170, %171 : vector<8x128xf32>
    %173 = arith.negf %169 : vector<8x128xf32>
    %174 = math.exp %173 : vector<8x128xf32>
    %cst_40 = arith.constant 1.000000e+00 : f32
    %175 = vector.broadcast %cst_40 : f32 to vector<8x128xf32>
    %176 = arith.addf %175, %174 : vector<8x128xf32>
    %177 = arith.divf %175, %176 : vector<8x128xf32>
    %178 = vector.extract_strided_slice %177 {offsets = [0, 0], sizes = [8, 32], strides = [1, 1]} : vector<8x128xf32> to vector<8x32xf32>
    %179 = vector.extract_strided_slice %177 {offsets = [0, 32], sizes = [8, 32], strides = [1, 1]} : vector<8x128xf32> to vector<8x32xf32>
    %180 = vector.extract_strided_slice %177 {offsets = [0, 64], sizes = [8, 32], strides = [1, 1]} : vector<8x128xf32> to vector<8x32xf32>
    %cst_41 = arith.constant 2.000000e+00 : f32
    %181 = vector.broadcast %cst_41 : f32 to vector<8x32xf32>
    %182 = arith.mulf %181, %180 : vector<8x32xf32>
    %cst_42 = arith.constant 1.000000e+00 : f32
    %183 = vector.broadcast %cst_42 : f32 to vector<8x32xf32>
    %184 = arith.subf %182, %183 : vector<8x32xf32>
    %185 = vector.extract_strided_slice %177 {offsets = [0, 96], sizes = [8, 32], strides = [1, 1]} : vector<8x128xf32> to vector<8x32xf32>
    %186 = arith.mulf %179, %144 : vector<8x32xf32>
    %187 = arith.mulf %178, %184 : vector<8x32xf32>
    %188 = arith.addf %186, %187 : vector<8x32xf32>
    %189 = math.tanh %188 : vector<8x32xf32>
    %190 = arith.mulf %185, %189 : vector<8x32xf32>
    %191 = arith.negf %172 : vector<8x128xf32>
    %192 = math.exp %191 : vector<8x128xf32>
    %cst_43 = arith.constant 1.000000e+00 : f32
    %193 = vector.broadcast %cst_43 : f32 to vector<8x128xf32>
    %194 = arith.addf %193, %192 : vector<8x128xf32>
    %195 = arith.divf %193, %194 : vector<8x128xf32>
    %196 = vector.extract_strided_slice %195 {offsets = [0, 0], sizes = [8, 32], strides = [1, 1]} : vector<8x128xf32> to vector<8x32xf32>
    %197 = vector.extract_strided_slice %195 {offsets = [0, 32], sizes = [8, 32], strides = [1, 1]} : vector<8x128xf32> to vector<8x32xf32>
    %198 = vector.extract_strided_slice %195 {offsets = [0, 64], sizes = [8, 32], strides = [1, 1]} : vector<8x128xf32> to vector<8x32xf32>
    %cst_44 = arith.constant 2.000000e+00 : f32
    %199 = vector.broadcast %cst_44 : f32 to vector<8x32xf32>
    %200 = arith.mulf %199, %198 : vector<8x32xf32>
    %cst_45 = arith.constant 1.000000e+00 : f32
    %201 = vector.broadcast %cst_45 : f32 to vector<8x32xf32>
    %202 = arith.subf %200, %201 : vector<8x32xf32>
    %203 = vector.extract_strided_slice %195 {offsets = [0, 96], sizes = [8, 32], strides = [1, 1]} : vector<8x128xf32> to vector<8x32xf32>
    %204 = arith.mulf %197, %162 : vector<8x32xf32>
    %205 = arith.mulf %196, %202 : vector<8x32xf32>
    %206 = arith.addf %204, %205 : vector<8x32xf32>
    %207 = math.tanh %206 : vector<8x32xf32>
    %208 = arith.mulf %203, %207 : vector<8x32xf32>
    %cst_46 = arith.constant dense<0.000000e+00> : vector<8x256xf32>
    %209 = tpu.matmul %208, %6, %cst_46 {dimension_numbers = #tpu.dot_dimension_numbers<[1], [0], [0], [1], [0, 0, 1, 1], [], []>} : vector<8x32xf32>, vector<32x256xf32>, vector<8x256xf32> -> vector<8x256xf32>
    %210 = vector.extract_strided_slice %209 {offsets = [0, 128], sizes = [8, 128], strides = [1, 1]} : vector<8x256xf32> to vector<8x128xf32>
    %cst_47 = arith.constant dense<0.000000e+00> : vector<8x128xf32>
    %211 = tpu.matmul %190, %1, %cst_47 {dimension_numbers = #tpu.dot_dimension_numbers<[1], [0], [0], [1], [0, 0, 1, 1], [], []>} : vector<8x32xf32>, vector<32x128xf32>, vector<8x128xf32> -> vector<8x128xf32>
    %212 = arith.addf %210, %211 : vector<8x128xf32>
    %213 = arith.addf %212, %12 : vector<8x128xf32>
    %214 = vector.extract_strided_slice %10 {offsets = [40, 0], sizes = [8, 128], strides = [1, 1]} : vector<64x128xf32> to vector<8x128xf32>
    %215 = vector.extract_strided_slice %209 {offsets = [0, 0], sizes = [8, 128], strides = [1, 1]} : vector<8x256xf32> to vector<8x128xf32>
    %216 = arith.addf %214, %215 : vector<8x128xf32>
    %217 = arith.negf %213 : vector<8x128xf32>
    %218 = math.exp %217 : vector<8x128xf32>
    %cst_48 = arith.constant 1.000000e+00 : f32
    %219 = vector.broadcast %cst_48 : f32 to vector<8x128xf32>
    %220 = arith.addf %219, %218 : vector<8x128xf32>
    %221 = arith.divf %219, %220 : vector<8x128xf32>
    %222 = vector.extract_strided_slice %221 {offsets = [0, 0], sizes = [8, 32], strides = [1, 1]} : vector<8x128xf32> to vector<8x32xf32>
    %223 = vector.extract_strided_slice %221 {offsets = [0, 32], sizes = [8, 32], strides = [1, 1]} : vector<8x128xf32> to vector<8x32xf32>
    %224 = vector.extract_strided_slice %221 {offsets = [0, 64], sizes = [8, 32], strides = [1, 1]} : vector<8x128xf32> to vector<8x32xf32>
    %cst_49 = arith.constant 2.000000e+00 : f32
    %225 = vector.broadcast %cst_49 : f32 to vector<8x32xf32>
    %226 = arith.mulf %225, %224 : vector<8x32xf32>
    %cst_50 = arith.constant 1.000000e+00 : f32
    %227 = vector.broadcast %cst_50 : f32 to vector<8x32xf32>
    %228 = arith.subf %226, %227 : vector<8x32xf32>
    %229 = vector.extract_strided_slice %221 {offsets = [0, 96], sizes = [8, 32], strides = [1, 1]} : vector<8x128xf32> to vector<8x32xf32>
    %230 = arith.mulf %223, %188 : vector<8x32xf32>
    %231 = arith.mulf %222, %228 : vector<8x32xf32>
    %232 = arith.addf %230, %231 : vector<8x32xf32>
    %233 = math.tanh %232 : vector<8x32xf32>
    %234 = arith.mulf %229, %233 : vector<8x32xf32>
    %235 = arith.negf %216 : vector<8x128xf32>
    %236 = math.exp %235 : vector<8x128xf32>
    %cst_51 = arith.constant 1.000000e+00 : f32
    %237 = vector.broadcast %cst_51 : f32 to vector<8x128xf32>
    %238 = arith.addf %237, %236 : vector<8x128xf32>
    %239 = arith.divf %237, %238 : vector<8x128xf32>
    %240 = vector.extract_strided_slice %239 {offsets = [0, 0], sizes = [8, 32], strides = [1, 1]} : vector<8x128xf32> to vector<8x32xf32>
    %241 = vector.extract_strided_slice %239 {offsets = [0, 32], sizes = [8, 32], strides = [1, 1]} : vector<8x128xf32> to vector<8x32xf32>
    %242 = vector.extract_strided_slice %239 {offsets = [0, 64], sizes = [8, 32], strides = [1, 1]} : vector<8x128xf32> to vector<8x32xf32>
    %cst_52 = arith.constant 2.000000e+00 : f32
    %243 = vector.broadcast %cst_52 : f32 to vector<8x32xf32>
    %244 = arith.mulf %243, %242 : vector<8x32xf32>
    %cst_53 = arith.constant 1.000000e+00 : f32
    %245 = vector.broadcast %cst_53 : f32 to vector<8x32xf32>
    %246 = arith.subf %244, %245 : vector<8x32xf32>
    %247 = vector.extract_strided_slice %239 {offsets = [0, 96], sizes = [8, 32], strides = [1, 1]} : vector<8x128xf32> to vector<8x32xf32>
    %248 = arith.mulf %241, %206 : vector<8x32xf32>
    %249 = arith.mulf %240, %246 : vector<8x32xf32>
    %250 = arith.addf %248, %249 : vector<8x32xf32>
    %251 = math.tanh %250 : vector<8x32xf32>
    %252 = arith.mulf %247, %251 : vector<8x32xf32>
    %cst_54 = arith.constant dense<0.000000e+00> : vector<8x256xf32>
    %253 = tpu.matmul %252, %6, %cst_54 {dimension_numbers = #tpu.dot_dimension_numbers<[1], [0], [0], [1], [0, 0, 1, 1], [], []>} : vector<8x32xf32>, vector<32x256xf32>, vector<8x256xf32> -> vector<8x256xf32>
    %254 = vector.extract_strided_slice %253 {offsets = [0, 128], sizes = [8, 128], strides = [1, 1]} : vector<8x256xf32> to vector<8x128xf32>
    %cst_55 = arith.constant dense<0.000000e+00> : vector<8x128xf32>
    %255 = tpu.matmul %234, %1, %cst_55 {dimension_numbers = #tpu.dot_dimension_numbers<[1], [0], [0], [1], [0, 0, 1, 1], [], []>} : vector<8x32xf32>, vector<32x128xf32>, vector<8x128xf32> -> vector<8x128xf32>
    %256 = arith.addf %254, %255 : vector<8x128xf32>
    %257 = arith.addf %256, %12 : vector<8x128xf32>
    %258 = vector.extract_strided_slice %10 {offsets = [48, 0], sizes = [8, 128], strides = [1, 1]} : vector<64x128xf32> to vector<8x128xf32>
    %259 = vector.extract_strided_slice %253 {offsets = [0, 0], sizes = [8, 128], strides = [1, 1]} : vector<8x256xf32> to vector<8x128xf32>
    %260 = arith.addf %258, %259 : vector<8x128xf32>
    %261 = arith.negf %257 : vector<8x128xf32>
    %262 = math.exp %261 : vector<8x128xf32>
    %cst_56 = arith.constant 1.000000e+00 : f32
    %263 = vector.broadcast %cst_56 : f32 to vector<8x128xf32>
    %264 = arith.addf %263, %262 : vector<8x128xf32>
    %265 = arith.divf %263, %264 : vector<8x128xf32>
    %266 = vector.extract_strided_slice %265 {offsets = [0, 0], sizes = [8, 32], strides = [1, 1]} : vector<8x128xf32> to vector<8x32xf32>
    %267 = vector.extract_strided_slice %265 {offsets = [0, 32], sizes = [8, 32], strides = [1, 1]} : vector<8x128xf32> to vector<8x32xf32>
    %268 = vector.extract_strided_slice %265 {offsets = [0, 64], sizes = [8, 32], strides = [1, 1]} : vector<8x128xf32> to vector<8x32xf32>
    %cst_57 = arith.constant 2.000000e+00 : f32
    %269 = vector.broadcast %cst_57 : f32 to vector<8x32xf32>
    %270 = arith.mulf %269, %268 : vector<8x32xf32>
    %cst_58 = arith.constant 1.000000e+00 : f32
    %271 = vector.broadcast %cst_58 : f32 to vector<8x32xf32>
    %272 = arith.subf %270, %271 : vector<8x32xf32>
    %273 = vector.extract_strided_slice %265 {offsets = [0, 96], sizes = [8, 32], strides = [1, 1]} : vector<8x128xf32> to vector<8x32xf32>
    %274 = arith.mulf %267, %232 : vector<8x32xf32>
    %275 = arith.mulf %266, %272 : vector<8x32xf32>
    %276 = arith.addf %274, %275 : vector<8x32xf32>
    %277 = math.tanh %276 : vector<8x32xf32>
    %278 = arith.mulf %273, %277 : vector<8x32xf32>
    %279 = arith.negf %260 : vector<8x128xf32>
    %280 = math.exp %279 : vector<8x128xf32>
    %cst_59 = arith.constant 1.000000e+00 : f32
    %281 = vector.broadcast %cst_59 : f32 to vector<8x128xf32>
    %282 = arith.addf %281, %280 : vector<8x128xf32>
    %283 = arith.divf %281, %282 : vector<8x128xf32>
    %284 = vector.extract_strided_slice %283 {offsets = [0, 0], sizes = [8, 32], strides = [1, 1]} : vector<8x128xf32> to vector<8x32xf32>
    %285 = vector.extract_strided_slice %283 {offsets = [0, 32], sizes = [8, 32], strides = [1, 1]} : vector<8x128xf32> to vector<8x32xf32>
    %286 = vector.extract_strided_slice %283 {offsets = [0, 64], sizes = [8, 32], strides = [1, 1]} : vector<8x128xf32> to vector<8x32xf32>
    %cst_60 = arith.constant 2.000000e+00 : f32
    %287 = vector.broadcast %cst_60 : f32 to vector<8x32xf32>
    %288 = arith.mulf %287, %286 : vector<8x32xf32>
    %cst_61 = arith.constant 1.000000e+00 : f32
    %289 = vector.broadcast %cst_61 : f32 to vector<8x32xf32>
    %290 = arith.subf %288, %289 : vector<8x32xf32>
    %291 = vector.extract_strided_slice %283 {offsets = [0, 96], sizes = [8, 32], strides = [1, 1]} : vector<8x128xf32> to vector<8x32xf32>
    %292 = arith.mulf %285, %250 : vector<8x32xf32>
    %293 = arith.mulf %284, %290 : vector<8x32xf32>
    %294 = arith.addf %292, %293 : vector<8x32xf32>
    %295 = math.tanh %294 : vector<8x32xf32>
    %296 = arith.mulf %291, %295 : vector<8x32xf32>
    %cst_62 = arith.constant dense<0.000000e+00> : vector<8x256xf32>
    %297 = tpu.matmul %296, %6, %cst_62 {dimension_numbers = #tpu.dot_dimension_numbers<[1], [0], [0], [1], [0, 0, 1, 1], [], []>} : vector<8x32xf32>, vector<32x256xf32>, vector<8x256xf32> -> vector<8x256xf32>
    %298 = vector.extract_strided_slice %297 {offsets = [0, 128], sizes = [8, 128], strides = [1, 1]} : vector<8x256xf32> to vector<8x128xf32>
    %cst_63 = arith.constant dense<0.000000e+00> : vector<8x128xf32>
    %299 = tpu.matmul %278, %1, %cst_63 {dimension_numbers = #tpu.dot_dimension_numbers<[1], [0], [0], [1], [0, 0, 1, 1], [], []>} : vector<8x32xf32>, vector<32x128xf32>, vector<8x128xf32> -> vector<8x128xf32>
    %300 = arith.addf %298, %299 : vector<8x128xf32>
    %301 = arith.addf %300, %12 : vector<8x128xf32>
    %302 = vector.extract_strided_slice %10 {offsets = [56, 0], sizes = [8, 128], strides = [1, 1]} : vector<64x128xf32> to vector<8x128xf32>
    %303 = vector.extract_strided_slice %297 {offsets = [0, 0], sizes = [8, 128], strides = [1, 1]} : vector<8x256xf32> to vector<8x128xf32>
    %304 = arith.addf %302, %303 : vector<8x128xf32>
    %305 = arith.negf %301 : vector<8x128xf32>
    %306 = math.exp %305 : vector<8x128xf32>
    %cst_64 = arith.constant 1.000000e+00 : f32
    %307 = vector.broadcast %cst_64 : f32 to vector<8x128xf32>
    %308 = arith.addf %307, %306 : vector<8x128xf32>
    %309 = arith.divf %307, %308 : vector<8x128xf32>
    %310 = vector.extract_strided_slice %309 {offsets = [0, 0], sizes = [8, 32], strides = [1, 1]} : vector<8x128xf32> to vector<8x32xf32>
    %311 = vector.extract_strided_slice %309 {offsets = [0, 32], sizes = [8, 32], strides = [1, 1]} : vector<8x128xf32> to vector<8x32xf32>
    %312 = vector.extract_strided_slice %309 {offsets = [0, 64], sizes = [8, 32], strides = [1, 1]} : vector<8x128xf32> to vector<8x32xf32>
    %cst_65 = arith.constant 2.000000e+00 : f32
    %313 = vector.broadcast %cst_65 : f32 to vector<8x32xf32>
    %314 = arith.mulf %313, %312 : vector<8x32xf32>
    %cst_66 = arith.constant 1.000000e+00 : f32
    %315 = vector.broadcast %cst_66 : f32 to vector<8x32xf32>
    %316 = arith.subf %314, %315 : vector<8x32xf32>
    %317 = vector.extract_strided_slice %309 {offsets = [0, 96], sizes = [8, 32], strides = [1, 1]} : vector<8x128xf32> to vector<8x32xf32>
    %318 = arith.mulf %311, %276 : vector<8x32xf32>
    %319 = arith.mulf %310, %316 : vector<8x32xf32>
    %320 = arith.addf %318, %319 : vector<8x32xf32>
    %321 = math.tanh %320 : vector<8x32xf32>
    %322 = arith.mulf %317, %321 : vector<8x32xf32>
    %323 = arith.negf %304 : vector<8x128xf32>
    %324 = math.exp %323 : vector<8x128xf32>
    %cst_67 = arith.constant 1.000000e+00 : f32
    %325 = vector.broadcast %cst_67 : f32 to vector<8x128xf32>
    %326 = arith.addf %325, %324 : vector<8x128xf32>
    %327 = arith.divf %325, %326 : vector<8x128xf32>
    %328 = vector.extract_strided_slice %327 {offsets = [0, 0], sizes = [8, 32], strides = [1, 1]} : vector<8x128xf32> to vector<8x32xf32>
    %329 = vector.extract_strided_slice %327 {offsets = [0, 32], sizes = [8, 32], strides = [1, 1]} : vector<8x128xf32> to vector<8x32xf32>
    %330 = vector.extract_strided_slice %327 {offsets = [0, 64], sizes = [8, 32], strides = [1, 1]} : vector<8x128xf32> to vector<8x32xf32>
    %cst_68 = arith.constant 2.000000e+00 : f32
    %331 = vector.broadcast %cst_68 : f32 to vector<8x32xf32>
    %332 = arith.mulf %331, %330 : vector<8x32xf32>
    %cst_69 = arith.constant 1.000000e+00 : f32
    %333 = vector.broadcast %cst_69 : f32 to vector<8x32xf32>
    %334 = arith.subf %332, %333 : vector<8x32xf32>
    %335 = vector.extract_strided_slice %327 {offsets = [0, 96], sizes = [8, 32], strides = [1, 1]} : vector<8x128xf32> to vector<8x32xf32>
    %336 = arith.mulf %329, %294 : vector<8x32xf32>
    %337 = arith.mulf %328, %334 : vector<8x32xf32>
    %338 = arith.addf %336, %337 : vector<8x32xf32>
    %339 = math.tanh %338 : vector<8x32xf32>
    %340 = arith.mulf %335, %339 : vector<8x32xf32>
    %cst_70 = arith.constant dense<0.000000e+00> : vector<8x256xf32>
    %341 = tpu.matmul %340, %6, %cst_70 {dimension_numbers = #tpu.dot_dimension_numbers<[1], [0], [0], [1], [0, 0, 1, 1], [], []>} : vector<8x32xf32>, vector<32x256xf32>, vector<8x256xf32> -> vector<8x256xf32>
    %342 = vector.extract_strided_slice %341 {offsets = [0, 128], sizes = [8, 128], strides = [1, 1]} : vector<8x256xf32> to vector<8x128xf32>
    %cst_71 = arith.constant dense<0.000000e+00> : vector<8x128xf32>
    %343 = tpu.matmul %322, %1, %cst_71 {dimension_numbers = #tpu.dot_dimension_numbers<[1], [0], [0], [1], [0, 0, 1, 1], [], []>} : vector<8x32xf32>, vector<32x128xf32>, vector<8x128xf32> -> vector<8x128xf32>
    %344 = arith.addf %342, %343 : vector<8x128xf32>
    %345 = arith.addf %344, %12 : vector<8x128xf32>
    %346 = arith.negf %345 : vector<8x128xf32>
    %347 = math.exp %346 : vector<8x128xf32>
    %cst_72 = arith.constant 1.000000e+00 : f32
    %348 = vector.broadcast %cst_72 : f32 to vector<8x128xf32>
    %349 = arith.addf %348, %347 : vector<8x128xf32>
    %350 = arith.divf %348, %349 : vector<8x128xf32>
    %351 = vector.extract_strided_slice %350 {offsets = [0, 0], sizes = [8, 32], strides = [1, 1]} : vector<8x128xf32> to vector<8x32xf32>
    %352 = vector.extract_strided_slice %350 {offsets = [0, 32], sizes = [8, 32], strides = [1, 1]} : vector<8x128xf32> to vector<8x32xf32>
    %353 = vector.extract_strided_slice %350 {offsets = [0, 64], sizes = [8, 32], strides = [1, 1]} : vector<8x128xf32> to vector<8x32xf32>
    %cst_73 = arith.constant 2.000000e+00 : f32
    %354 = vector.broadcast %cst_73 : f32 to vector<8x32xf32>
    %355 = arith.mulf %354, %353 : vector<8x32xf32>
    %cst_74 = arith.constant 1.000000e+00 : f32
    %356 = vector.broadcast %cst_74 : f32 to vector<8x32xf32>
    %357 = arith.subf %355, %356 : vector<8x32xf32>
    %358 = vector.extract_strided_slice %350 {offsets = [0, 96], sizes = [8, 32], strides = [1, 1]} : vector<8x128xf32> to vector<8x32xf32>
    %359 = arith.mulf %352, %320 : vector<8x32xf32>
    %360 = arith.mulf %351, %357 : vector<8x32xf32>
    %361 = arith.addf %359, %360 : vector<8x32xf32>
    %362 = math.tanh %361 : vector<8x32xf32>
    %363 = arith.mulf %358, %362 : vector<8x32xf32>
    %cst_75 = arith.constant dense<0.000000e+00> : vector<8x128xf32>
    %364 = tpu.matmul %363, %2, %cst_75 {dimension_numbers = #tpu.dot_dimension_numbers<[1], [0], [0], [1], [0, 0, 1, 1], [], []>} : vector<8x32xf32>, vector<32x128xf32>, vector<8x128xf32> -> vector<8x128xf32>
    %365 = vector.broadcast %5 : vector<1x128xf32> to vector<8x128xf32>
    %366 = arith.addf %364, %365 : vector<8x128xf32>
    %c0_76 = arith.constant 0 : index
    %c0_77 = arith.constant 0 : index
    %367 = vector.load %arg3[%c0_76, %c0_77] : memref<8x128xf32, #tpu.memory_space<vmem>>, vector<8x128xf32>
    tpu.vector_store %arg3[%c0_76, %c0_77], %366 {strides = array<i32>} : memref<8x128xf32, #tpu.memory_space<vmem>>, vector<8x128xf32>,
    return
  }
}

</mosaic_0001>

<bundles_post_ra>
// kernel: asl_lstm_forward.1
= control target key start
LH: loop header
LB: loop body
LE: loop exit
PB: predicated region body
PF: predicated region fallthrough
CT: control target
= control target key end

     0   :  { %8 = vsyncpa [#allocation3], 0  ;;  %s1531_s15 = smov [#allocation2]   ;;  %s1532_s17 = smov 256   ;;  %s1918_s0 = inlined_call_operand.vmem [shape: f32[64,16], index: 0, kind: input, shape index: {}]   ;;  %s1919_s1 = inlined_call_operand.hbm [shape: f32[32,256], index: 1, kind: input, shape index: {}]   ;;  %s1920_s2 = inlined_call_operand.vmem [shape: f32[88,128], index: 2, kind: input, shape index: {}]   ;;  %s1921_s3 = inlined_call_operand.vmem [shape: f32[8,128], index: 3, kind: output, shape index: {}]  }
   0x1   :  { %s15_s14 = sshll.u32 %s1919_s1, 4  ;;  %s17_s16 = sshll.u32 %s1531_s15, 4  ;;  %s16_s14 = int_to_ptr.hbm [resolvable:$true] %s15_s14  ;;  %s18_s16 = int_to_ptr.vmem [resolvable:$true] %s17_s16 }
   0x2   :  { %s1533_s18 = smov 16  }
   0x3   :  { %23 = dma.hbm_to_vmem [thread:$0]  %s16_s14, 1024, %s18_s16, [#allocation3], %s1532_s17, %s1532_s17, %s1533_s18  }
   0x4   :  { %1529 = dma.done.wait [#allocation3], 1024  }
   0x5   :  { %1530 = vsyncadd [#allocation3], 4294966272  ;;  %v31_v0 = vld [vmem:[%s1920_s2 + $0x8] sm:$0xff]  ;;  %v30_v1 = vld [vmem:[%s1920_s2] sm:$0xff]  ;;  %vm60_vm0 = vcmask 130048   ;;  %s1534_s26 = smov 64  }
   0x6   :  { %99 = vmatpush.msra.mxu0 %v31_v0  ;;  %v51_v2 = vld [vmem:[%s1918_s0] sm:$0xff]  ;;  %v1573_v3 = vld [vmem:[%s1920_s2 + $0x50] ss:$0 sm:$0xff]  ;;  %s1535_s27 = smov 32   ;;  %v1584_v28 = vld [vmem:[#allocation2 + $0x38] sm:$0xff]  ;;  %v1536_v42 = vmov 0.0  }
   0x7   :  { %v1582_v27 = vld [vmem:[#allocation2 + $0x30] sm:$0xff]  ;;  %v1589_v29 = vld [vmem:[%s1920_s2 + $0x28] sm:$0xff]  ;;  %203 = vmatpush.msra.mxu2 %v1584_v28  ;;  %v1593_v30 = vld [vmem:[#allocation2 + $0x20] sm:$0xff]  ;;  %vm168_vm5 = vcmask 261120  }
   0x8   :  { %100 = vmatpush.msra.mxu0 %v30_v1  ;;  %183 = vmatpush.msra.mxu1 %v1582_v27  ;;  %v1595_v31 = vld [vmem:[#allocation2 + $0x28] sm:$0xff]  ;;  %v1600_v32 = vld [vmem:[%s1920_s2 + $0x20] sm:$0xff]  ;;  %v1603_v33 = vld [vmem:[#allocation2 + $0x10] sm:$0xff] }
   0x9   :  { %1329 = vmatmul.msk.f32.vlgmr.msra.gmra.mxu0 %vm60_vm0, %v51_v2  ;;  %226 = vmatpush.msra.mxu3 %v1589_v29  ;;  %v1605_v34 = vld [vmem:[#allocation2 + $0x18] sm:$0xff]  ;;  %v52_v36 = vld [vmem:[%s1918_s0 + $0x8] sm:$0xff]  ;;  %v1619_v37 = vld [vmem:[#allocation2] sm:$0xff] }
   0xa   :  { %184 = vmatpush.msra.mxu1 %v1593_v30  ;;  %204 = vmatpush.msra.mxu2 %v1595_v31  ;;  %v1612_v35 = vld [vmem:[%s1920_s2 + $0x18] sm:$0xff]  ;;  %v1621_v38 = vld [vmem:[#allocation2 + $0x8] sm:$0xff]  ;;  %v1628_v39 = vld [vmem:[%s1920_s2 + $0x10] sm:$0xff] }
   0xb   :  { %227 = vmatpush.msra.mxu3 %v1600_v32  ;;  %v1665_v50 = vld [vmem:[%s1920_s2 + $0x51] ss:$0 sm:$0xff] }
   0xc   :  { %185 = vmatpush.msra.mxu1 %v1603_v33  ;;  %205 = vmatpush.msra.mxu2 %v1605_v34 }
   0xd   :  { %228 = vmatpush.msra.mxu3 %v1612_v35 }
   0xe   :  { %186 = vmatpush.msra.mxu1 %v1619_v37  ;;  %206 = vmatpush.msra.mxu2 %v1621_v38 }
   0xf   :  { %229 = vmatpush.msra.mxu3 %v1628_v39 }
  0x10   :  { %350 = vmatpush.msrb.mxu2 %v1584_v28  ;;  %330 = vmatpush.msrb.mxu1 %v1582_v27 }
  0x11   :  { %1330 = vmatmul.msk.f32.gmra.mxu0 %vm60_vm0, %v52_v36  ;;  %375 = vmatpush.msrb.mxu3 %v1589_v29 }
  0x12   :  { %351 = vmatpush.msrb.mxu2 %v1595_v31  ;;  %331 = vmatpush.msrb.mxu1 %v1593_v30 }
  0x13   :  { %376 = vmatpush.msrb.mxu3 %v1600_v32 }
  0x14   :  { %352 = vmatpush.msrb.mxu2 %v1605_v34  ;;  %332 = vmatpush.msrb.mxu1 %v1603_v33 }
  0x15   :  { %377 = vmatpush.msrb.mxu3 %v1612_v35 }
  0x16   :  { %353 = vmatpush.msrb.mxu2 %v1621_v38  ;;  %333 = vmatpush.msrb.mxu1 %v1619_v37 }
  0x17   :  { %378 = vmatpush.msrb.mxu3 %v1628_v39 }
  0x18   :  { %230 = vmatmul.f32.vlgmr.msra.gmra.mxu3 %v1536_v42 }
  0x19   :  { %524 = vmatpush.msra.mxu3 %v1589_v29 }
  0x1b   :  { %525 = vmatpush.msra.mxu3 %v1600_v32 }
  0x1d   :  { %526 = vmatpush.msra.mxu3 %v1612_v35 }
  0x1f   :  { %527 = vmatpush.msra.mxu3 %v1628_v39 }
  0x86   :  { %v102_v4 = vpop.f32.mrf.mxu0 }
  0x87   :  { %v103_v5 = vadd.f32 %v1573_v3, %v102_v4 }
  0x89   :  { %v1337_v6 = vmul.f32 -1.442695, %v103_v5 }
  0x8b   :  { %1401 = vpow2.f32 %v1337_v6 }
  0x8e   :  { %v105_v44 = vpop.f32.mrf.mxu0 }
  0x8f   :  { %v106_v45 = vadd.f32 %v1573_v3, %v105_v44 }
  0x91   :  { %v1402_v7 = vpop.eup %1401 }
  0x92   :  { %v130_v8 = vadd.f32 1.0, %v1402_v7 }
  0x94   :  { %1403 = vrcp.f32 %v130_v8  ;;  %v142_v12 = vand.u32 2147483648, %v130_v8  ;;  %v140_v14 = vand.u32 2147483647, %v130_v8  ;;  %vm136_vm2 = vweird.f32 %v130_v8 }
  0x96   :  { %v143_v16 = vor.u32 1.1754944e-38, %v142_v12  ;;  %vm141_vm4 = vcmp.eq.f32.partialorder %v140_v14, 8.507059e+37 }
  0x9a   :  { %v1404_v9 = vpop.eup %1403 }
  0x9b   :  { %v132_v10 = vmul.f32 %v1404_v9, %v130_v8  ;;  %vm137_vm1 = vweird.f32 %v1404_v9  ;;  %v231_v49 = vpop.f32.mrf.mxu3 }
  0x9c   :  { %vm138_vm3 = vmor %vm136_vm2, %vm137_vm1 }
  0x9d   :  { %v133_v11 = vsub.f32 1.0, %v132_v10 }
  0x9f   :  { %v134_v13 = vmul.f32 %v1404_v9, %v133_v11 }
  0xa1   :  { %v135_v15 = vadd.f32 %v1404_v9, %v134_v13 }
  0xa3   :  { %v139_v17 = vsel %vm138_vm3, %v1404_v9, %v135_v15 }
  0xa4   :  { %v144_v18 = vsel %vm141_vm4, %v143_v16, %v139_v17 }
  0xa5   :  { %v146_v19 = vmul.f32 2.0, %v144_v18  ;;  %v148_v23 = vmul.f32 0.0, %v144_v18 }
  0xa7   :  { %v1338_v20 = vadd.f32 -1.0, %v146_v19 }
  0xa9   :  { %150 = vrot.lane.b32.xlu0 %v1338_v20, %s1534_s26 }
 0x11b   :  { %v151_v21 = vpop.permute.xlu0 %150 }
 0x11c   :  { %v153_v22 = vmul.f32 %v151_v21, %v144_v18 }
 0x11e   :  { %155 = vrot.lane.b32.xlu0 %v153_v22, %s1535_s27 }
 0x190   :  { %v156_v24 = vpop.permute.xlu0 %155 }
 0x191   :  { %v1578_v25 = vadd.f32 %v156_v24, %v148_v23 }
 0x193   :  { %1405 = vtanh.f32 %v1578_v25 }
 0x199   :  { %v1406_v26 = vpop.eup %1405 }
 0x19a   :  { %161 = vrot.lane.b32.xlu1 %v1406_v26, %s1534_s26 }
 0x20c   :  { %v162_v40 = vpop.permute.xlu1 %161 }
 0x20d   :  { %v164_v41 = vmul.f32 %v162_v40, %v144_v18 }
 0x20f   :  { %166 = vrot.lane.b32.xlu1 %v164_v41, %s1535_s27 }
 0x281   :  { %v167_v43 = vpop.permute.xlu1 %166 }
 0x282   :  { %1339 = vmatmul.msk.f32.vlgmr.msra.gmra.mxu1 %vm168_vm5, %v167_v43  ;;  %1340 = vmatmul.msk.f32.vlgmr.msra.gmra.mxu2 %vm168_vm5, %v167_v43 }
 0x283   :  { %479 = vmatpush.msra.mxu1 %v1582_v27  ;;  %499 = vmatpush.msra.mxu2 %v1584_v28 }
 0x285   :  { %480 = vmatpush.msra.mxu1 %v1593_v30  ;;  %500 = vmatpush.msra.mxu2 %v1595_v31 }
 0x287   :  { %481 = vmatpush.msra.mxu1 %v1603_v33  ;;  %501 = vmatpush.msra.mxu2 %v1605_v34 }
 0x289   :  { %482 = vmatpush.msra.mxu1 %v1619_v37  ;;  %502 = vmatpush.msra.mxu2 %v1621_v38 }
 0x2ff   :  { %v188_v46 = vpop.f32.mrf.mxu1 }
 0x300   :  { %v236_v47 = vadd.f32 %v188_v46, %v106_v45 }
 0x302   :  { %v1343_v48 = vmul.f32 -1.442695, %v236_v47 }
 0x304   :  { %1407 = vpow2.f32 %v1343_v48 }
 0x305   :  { %v208_v51 = vpop.f32.mrf.mxu2 }
 0x306   :  { %v234_v52 = vadd.f32 %v231_v49, %v208_v51 }
 0x308   :  { %v235_v53 = vadd.f32 %v1665_v50, %v234_v52 }
 0x30a   :  { %v1408_v54 = vpop.eup %1407  ;;  %v1341_v55 = vmul.f32 -1.442695, %v235_v53 }
 0x30b   :  { %v278_v56 = vadd.f32 1.0, %v1408_v54 }
 0x30c   :  { %1409 = vpow2.f32 %v1341_v55 }
 0x30d   :  { %1411 = vrcp.f32 %v278_v56  ;;  %v290_v9 = vand.u32 2147483648, %v278_v56  ;;  %vm284_vm11 = vweird.f32 %v278_v56  ;;  %v288_v11 = vand.u32 2147483647, %v278_v56 }
 0x30f   :  { %v291_v15 = vor.u32 1.1754944e-38, %v290_v9  ;;  %vm289_vm13 = vcmp.eq.f32.partialorder %v288_v11, 8.507059e+37 }
 0x312   :  { %v1410_v57 = vpop.eup %1409 }
 0x313   :  { %v1412_v58 = vpop.eup %1411  ;;  %v240_v59 = vadd.f32 1.0, %v1410_v57 }
 0x314   :  { %v280_v60 = vmul.f32 %v1412_v58, %v278_v56  ;;  %vm285_vm8 = vweird.f32 %v1412_v58 }
 0x315   :  { %1413 = vrcp.f32 %v240_v59  ;;  %v252_v2 = vand.u32 2147483648, %v240_v59  ;;  %v250_v5 = vand.u32 2147483647, %v240_v59  ;;  %vm246_vm7 = vweird.f32 %v240_v59  ;;  %vm286_vm12 = vmor %vm284_vm11, %vm285_vm8 }
 0x316   :  { %v281_v61 = vsub.f32 1.0, %v280_v60 }
 0x317   :  { %v253_v8 = vor.u32 1.1754944e-38, %v252_v2  ;;  %vm251_vm10 = vcmp.eq.f32.partialorder %v250_v5, 8.507059e+37 }
 0x318   :  { %v282_v1 = vmul.f32 %v1412_v58, %v281_v61 }
 0x31a   :  { %v283_v7 = vadd.f32 %v1412_v58, %v282_v1 }
 0x31b   :  { %v1414_v62 = vpop.eup %1413 }
 0x31c   :  { %v242_v63 = vmul.f32 %v1414_v62, %v240_v59  ;;  %vm247_vm6 = vweird.f32 %v1414_v62  ;;  %v287_v14 = vsel %vm286_vm12, %v1412_v58, %v283_v7 }
 0x31d   :  { %vm248_vm9 = vmor %vm246_vm7, %vm247_vm6  ;;  %v292_v17 = vsel %vm289_vm13, %v291_v15, %v287_v14 }
 0x31e   :  { %v243_v0 = vsub.f32 1.0, %v242_v63  ;;  %v294_v18 = vmul.f32 2.0, %v292_v17  ;;  %v296_v40 = vmul.f32 %v292_v17, %v1578_v25  ;;  %v53_v25 = vld [vmem:[%s1918_s0 + $0x10] sm:$0xff] }
 0x31f   :  { %1331 = vmatmul.msk.f32.gmra.mxu0 %vm60_vm0, %v53_v25 }
 0x320   :  { %v244_v4 = vmul.f32 %v1414_v62, %v243_v0  ;;  %v1344_v19 = vadd.f32 -1.0, %v294_v18 }
 0x322   :  { %v245_v6 = vadd.f32 %v1414_v62, %v244_v4 }
 0x324   :  { %v249_v10 = vsel %vm248_vm9, %v1414_v62, %v245_v6 }
 0x325   :  { %v254_v12 = vsel %vm251_vm10, %v253_v8, %v249_v10 }
 0x326   :  { %v256_v13 = vmul.f32 2.0, %v254_v12  ;;  %v258_v24 = vmul.f32 0.0, %v254_v12 }
 0x328   :  { %v1342_v16 = vadd.f32 -1.0, %v256_v13 }
 0x32a   :  { %260 = vrot.lane.b32.xlu2 %v1342_v16, %s1534_s26 }
 0x332   :  { %298 = vrot.lane.b32.xlu2 %v1344_v19, %s1534_s26 }
 0x384   :  { %v261_v20 = vpop.permute.xlu2 %260 }
 0x385   :  { %v263_v21 = vmul.f32 %v261_v20, %v254_v12 }
 0x387   :  { %265 = vrot.lane.b32.xlu0 %v263_v21, %s1535_s27 }
 0x38c   :  { %v299_v22 = vpop.permute.xlu2 %298 }
 0x38d   :  { %v301_v23 = vmul.f32 %v299_v22, %v292_v17 }
 0x38f   :  { %303 = vrot.lane.b32.xlu1 %v301_v23, %s1535_s27 }
 0x39c   :  { %v108_v52 = vpop.f32.mrf.mxu0 }
 0x39d   :  { %v109_v53 = vadd.f32 %v1573_v3, %v108_v52 }
 0x3f9   :  { %v266_v26 = vpop.permute.xlu0 %265 }
 0x3fa   :  { %v1672_v36 = vadd.f32 %v266_v26, %v258_v24 }
 0x3fc   :  { %1415 = vtanh.f32 %v1672_v36 }
 0x401   :  { %v304_v41 = vpop.permute.xlu1 %303 }
 0x402   :  { %v1416_v42 = vpop.eup %1415  ;;  %v1676_v43 = vadd.f32 %v304_v41, %v296_v40 }
 0x403   :  { %271 = vrot.lane.b32.xlu2 %v1416_v42, %s1534_s26 }
 0x404   :  { %1417 = vtanh.f32 %v1676_v43 }
 0x40a   :  { %v1418_v44 = vpop.eup %1417 }
 0x40b   :  { %309 = vrot.lane.b32.xlu0 %v1418_v44, %s1534_s26 }
 0x45d   :  { %v272_v45 = vpop.permute.xlu2 %271 }
 0x45e   :  { %v274_v46 = vmul.f32 %v272_v45, %v254_v12 }
 0x460   :  { %359 = vrot.lane.b32.xlu2 %v274_v46, %s1535_s27 }
 0x47d   :  { %v310_v47 = vpop.permute.xlu0 %309 }
 0x47e   :  { %v312_v48 = vmul.f32 %v310_v47, %v292_v17 }
 0x480   :  { %314 = vrot.lane.b32.xlu1 %v312_v48, %s1535_s27 }
 0x4ba   :  { %v360_v49 = vpop.permute.xlu2 %359 }
 0x4bb   :  { %1347 = vmatmul.msk.f32.vlgmr.msrb.gmra.mxu3 %vm168_vm5, %v360_v49 }
 0x4bc   :  { %673 = vmatpush.msrb.mxu3 %v1589_v29 }
 0x4be   :  { %674 = vmatpush.msrb.mxu3 %v1600_v32 }
 0x4c0   :  { %675 = vmatpush.msrb.mxu3 %v1612_v35 }
 0x4c2   :  { %676 = vmatpush.msrb.mxu3 %v1628_v39 }
 0x4f2   :  { %v315_v51 = vpop.permute.xlu1 %314 }
 0x4f3   :  { %1345 = vmatmul.msk.f32.vlgmr.msrb.gmra.mxu1 %vm168_vm5, %v315_v51  ;;  %1346 = vmatmul.msk.f32.vlgmr.msrb.gmra.mxu2 %vm168_vm5, %v315_v51 }
 0x4f4   :  { %628 = vmatpush.msrb.mxu1 %v1582_v27  ;;  %648 = vmatpush.msrb.mxu2 %v1584_v28 }
 0x4f6   :  { %629 = vmatpush.msrb.mxu1 %v1593_v30  ;;  %649 = vmatpush.msrb.mxu2 %v1595_v31 }
 0x4f8   :  { %630 = vmatpush.msrb.mxu1 %v1603_v33  ;;  %650 = vmatpush.msrb.mxu2 %v1605_v34 }
 0x4fa   :  { %631 = vmatpush.msrb.mxu1 %v1619_v37  ;;  %651 = vmatpush.msrb.mxu2 %v1621_v38 }
 0x53e   :  { %v380_v57 = vpop.f32.mrf.mxu3 }
 0x570   :  { %v335_v54 = vpop.f32.mrf.mxu1 }
 0x571   :  { %v385_v55 = vadd.f32 %v335_v54, %v109_v53 }
 0x573   :  { %v1350_v56 = vmul.f32 -1.442695, %v385_v55 }
 0x575   :  { %1419 = vpow2.f32 %v1350_v56 }
 0x576   :  { %v355_v58 = vpop.f32.mrf.mxu2 }
 0x577   :  { %v383_v59 = vadd.f32 %v380_v57, %v355_v58 }
 0x579   :  { %v384_v60 = vadd.f32 %v1665_v50, %v383_v59 }
 0x57b   :  { %v1420_v61 = vpop.eup %1419  ;;  %v1348_v62 = vmul.f32 -1.442695, %v384_v60 }
 0x57c   :  { %v427_v63 = vadd.f32 1.0, %v1420_v61 }
 0x57d   :  { %1421 = vpow2.f32 %v1348_v62 }
 0x57e   :  { %1423 = vrcp.f32 %v427_v63  ;;  %v439_v6 = vand.u32 2147483648, %v427_v63  ;;  %v437_v8 = vand.u32 2147483647, %v427_v63  ;;  %vm433_vm15 = vweird.f32 %v427_v63 }
 0x580   :  { %v440_v11 = vor.u32 1.1754944e-38, %v439_v6  ;;  %vm438_vm2 = vcmp.eq.f32.partialorder %v437_v8, 8.507059e+37 }
 0x583   :  { %v1422_v0 = vpop.eup %1421 }
 0x584   :  { %v1424_v1 = vpop.eup %1423  ;;  %v389_v2 = vadd.f32 1.0, %v1422_v0 }
 0x585   :  { %v429_v4 = vmul.f32 %v1424_v1, %v427_v63  ;;  %vm434_vm14 = vweird.f32 %v1424_v1 }
 0x586   :  { %1425 = vrcp.f32 %v389_v2  ;;  %vm435_vm1 = vmor %vm433_vm15, %vm434_vm14  ;;  %v401_v17 = vand.u32 2147483648, %v389_v2  ;;  %v399_v20 = vand.u32 2147483647, %v389_v2  ;;  %vm395_vm4 = vweird.f32 %v389_v2 }
 0x587   :  { %v430_v5 = vsub.f32 1.0, %v429_v4 }
 0x588   :  { %v402_v22 = vor.u32 1.1754944e-38, %v401_v17  ;;  %vm400_vm7 = vcmp.eq.f32.partialorder %v399_v20, 8.507059e+37 }
 0x589   :  { %v431_v7 = vmul.f32 %v1424_v1, %v430_v5 }
 0x58b   :  { %v432_v9 = vadd.f32 %v1424_v1, %v431_v7 }
 0x58c   :  { %v1426_v10 = vpop.eup %1425 }
 0x58d   :  { %v391_v12 = vmul.f32 %v1426_v10, %v389_v2  ;;  %v436_v13 = vsel %vm435_vm1, %v1424_v1, %v432_v9  ;;  %vm396_vm3 = vweird.f32 %v1426_v10 }
 0x58e   :  { %v441_v14 = vsel %vm438_vm2, %v440_v11, %v436_v13  ;;  %vm397_vm6 = vmor %vm395_vm4, %vm396_vm3 }
 0x58f   :  { %v392_v15 = vsub.f32 1.0, %v391_v12  ;;  %v443_v16 = vmul.f32 2.0, %v441_v14  ;;  %v445_v49 = vmul.f32 %v441_v14, %v1676_v43 }
 0x591   :  { %v1351_v18 = vadd.f32 -1.0, %v443_v16  ;;  %v393_v19 = vmul.f32 %v1426_v10, %v392_v15 }
 0x593   :  { %447 = vrot.lane.b32.xlu1 %v1351_v18, %s1534_s26  ;;  %v394_v21 = vadd.f32 %v1426_v10, %v393_v19 }
 0x595   :  { %v398_v23 = vsel %vm397_vm6, %v1426_v10, %v394_v21 }
 0x596   :  { %v403_v24 = vsel %vm400_vm7, %v402_v22, %v398_v23 }
 0x597   :  { %v405_v26 = vmul.f32 2.0, %v403_v24  ;;  %v407_v46 = vmul.f32 %v403_v24, %v1672_v36  ;;  %v54_v36 = vld [vmem:[%s1918_s0 + $0x18] sm:$0xff] }
 0x598   :  { %1332 = vmatmul.msk.f32.gmra.mxu0 %vm60_vm0, %v54_v36 }
 0x599   :  { %v1349_v40 = vadd.f32 -1.0, %v405_v26 }
 0x59b   :  { %409 = vrot.lane.b32.xlu0 %v1349_v40, %s1534_s26 }
 0x605   :  { %v448_v41 = vpop.permute.xlu1 %447 }
 0x606   :  { %v450_v42 = vmul.f32 %v448_v41, %v441_v14 }
 0x608   :  { %452 = vrot.lane.b32.xlu0 %v450_v42, %s1535_s27 }
 0x60d   :  { %v410_v44 = vpop.permute.xlu0 %409 }
 0x60e   :  { %v412_v45 = vmul.f32 %v410_v44, %v403_v24 }
 0x610   :  { %414 = vrot.lane.b32.xlu2 %v412_v45, %s1535_s27 }
 0x615   :  { %v111_v59 = vpop.f32.mrf.mxu0 }
 0x616   :  { %v112_v60 = vadd.f32 %v1573_v3, %v111_v59 }
 0x66a   :  { %v415_v47 = vpop.permute.xlu2 %414 }
 0x66b   :  { %v1709_v48 = vadd.f32 %v415_v47, %v407_v46 }
 0x66d   :  { %1427 = vtanh.f32 %v1709_v48 }
 0x673   :  { %v1428_v25 = vpop.eup %1427 }
 0x674   :  { %420 = vrot.lane.b32.xlu1 %v1428_v25, %s1534_s26 }
 0x67a   :  { %v453_v51 = vpop.permute.xlu0 %452 }
 0x67b   :  { %v1714_v52 = vadd.f32 %v453_v51, %v445_v49 }
 0x67d   :  { %1429 = vtanh.f32 %v1714_v52 }
 0x683   :  { %v1430_v53 = vpop.eup %1429 }
 0x684   :  { %458 = vrot.lane.b32.xlu2 %v1430_v53, %s1534_s26 }
 0x6de   :  { %v459_v54 = vpop.permute.xlu2 %458 }
 0x6df   :  { %v461_v55 = vmul.f32 %v459_v54, %v441_v14 }
 0x6e1   :  { %463 = vrot.lane.b32.xlu0 %v461_v55, %s1535_s27 }
 0x6e6   :  { %v421_v56 = vpop.permute.xlu1 %420 }
 0x6e7   :  { %v423_v43 = vmul.f32 %v421_v56, %v403_v24 }
 0x6e9   :  { %508 = vrot.lane.b32.xlu1 %v423_v43, %s1535_s27 }
 0x753   :  { %v464_v57 = vpop.permute.xlu0 %463 }
 0x754   :  { %1352 = vmatmul.msk.f32.vlgmr.msra.gmra.mxu1 %vm168_vm5, %v464_v57  ;;  %1353 = vmatmul.msk.f32.vlgmr.msra.gmra.mxu2 %vm168_vm5, %v464_v57 }
 0x755   :  { %777 = vmatpush.msra.mxu1 %v1582_v27  ;;  %797 = vmatpush.msra.mxu2 %v1584_v28 }
 0x757   :  { %778 = vmatpush.msra.mxu1 %v1593_v30  ;;  %798 = vmatpush.msra.mxu2 %v1595_v31 }
 0x759   :  { %779 = vmatpush.msra.mxu1 %v1603_v33  ;;  %799 = vmatpush.msra.mxu2 %v1605_v34 }
 0x75b   :  { %v509_v58 = vpop.permute.xlu1 %508  ;;  %780 = vmatpush.msra.mxu1 %v1619_v37  ;;  %800 = vmatpush.msra.mxu2 %v1621_v38 }
 0x75c   :  { %1354 = vmatmul.msk.f32.vlgmr.msra.gmra.mxu3 %vm168_vm5, %v509_v58 }
 0x75d   :  { %822 = vmatpush.msra.mxu3 %v1589_v29 }
 0x75f   :  { %823 = vmatpush.msra.mxu3 %v1600_v32 }
 0x761   :  { %824 = vmatpush.msra.mxu3 %v1612_v35 }
 0x763   :  { %825 = vmatpush.msra.mxu3 %v1628_v39 }
 0x7d1   :  { %v484_v61 = vpop.f32.mrf.mxu1 }
 0x7d2   :  { %v534_v62 = vadd.f32 %v484_v61, %v112_v60 }
 0x7d4   :  { %v1357_v63 = vmul.f32 -1.442695, %v534_v62 }
 0x7d6   :  { %1431 = vpow2.f32 %v1357_v63 }
 0x7d7   :  { %v504_v2 = vpop.f32.mrf.mxu2 }
 0x7dc   :  { %v1432_v0 = vpop.eup %1431 }
 0x7dd   :  { %v576_v1 = vadd.f32 1.0, %v1432_v0 }
 0x7df   :  { %1433 = vrcp.f32 %v576_v1  ;;  %v529_v4 = vpop.f32.mrf.mxu3  ;;  %v588_v11 = vand.u32 2147483648, %v576_v1  ;;  %v586_v13 = vand.u32 2147483647, %v576_v1  ;;  %vm582_vm9 = vweird.f32 %v576_v1 }
 0x7e0   :  { %v532_v5 = vadd.f32 %v529_v4, %v504_v2 }
 0x7e1   :  { %v589_v17 = vor.u32 1.1754944e-38, %v588_v11  ;;  %vm587_vm11 = vcmp.eq.f32.partialorder %v586_v13, 8.507059e+37 }
 0x7e2   :  { %v533_v6 = vadd.f32 %v1665_v50, %v532_v5 }
 0x7e4   :  { %v1355_v7 = vmul.f32 -1.442695, %v533_v6 }
 0x7e5   :  { %v1434_v8 = vpop.eup %1433 }
 0x7e6   :  { %v578_v9 = vmul.f32 %v1434_v8, %v576_v1  ;;  %1435 = vpow2.f32 %v1355_v7  ;;  %vm583_vm8 = vweird.f32 %v1434_v8 }
 0x7e7   :  { %vm584_vm10 = vmor %vm582_vm9, %vm583_vm8 }
 0x7e8   :  { %v579_v10 = vsub.f32 1.0, %v578_v9 }
 0x7ea   :  { %v580_v12 = vmul.f32 %v1434_v8, %v579_v10 }
 0x7ec   :  { %v1436_v14 = vpop.eup %1435  ;;  %v581_v15 = vadd.f32 %v1434_v8, %v580_v12 }
 0x7ed   :  { %v538_v16 = vadd.f32 1.0, %v1436_v14 }
 0x7ee   :  { %v585_v18 = vsel %vm584_vm10, %v1434_v8, %v581_v15 }
 0x7ef   :  { %1437 = vrcp.f32 %v538_v16  ;;  %v590_v19 = vsel %vm587_vm11, %v589_v17, %v585_v18  ;;  %v550_v26 = vand.u32 2147483648, %v538_v16  ;;  %v548_v41 = vand.u32 2147483647, %v538_v16 }
 0x7f0   :  { %v592_v20 = vmul.f32 2.0, %v590_v19  ;;  %vm544_vm13 = vweird.f32 %v538_v16  ;;  %v594_v54 = vmul.f32 %v590_v19, %v1714_v52  ;;  %v55_v52 = vld [vmem:[%s1918_s0 + $0x20] sm:$0xff] }
 0x7f1   :  { %v551_v44 = vor.u32 1.1754944e-38, %v550_v26  ;;  %vm549_vm15 = vcmp.eq.f32.partialorder %v548_v41, 8.507059e+37  ;;  %1333 = vmatmul.msk.f32.gmra.mxu0 %vm60_vm0, %v55_v52 }
 0x7f2   :  { %v1358_v21 = vadd.f32 -1.0, %v592_v20 }
 0x7f4   :  { %596 = vrot.lane.b32.xlu0 %v1358_v21, %s1534_s26 }
 0x7f5   :  { %v1438_v22 = vpop.eup %1437 }
 0x7f6   :  { %v540_v23 = vmul.f32 %v1438_v22, %v538_v16  ;;  %vm545_vm12 = vweird.f32 %v1438_v22 }
 0x7f7   :  { %vm546_vm14 = vmor %vm544_vm13, %vm545_vm12 }
 0x7f8   :  { %v541_v24 = vsub.f32 1.0, %v540_v23 }
 0x7fa   :  { %v542_v40 = vmul.f32 %v1438_v22, %v541_v24 }
 0x7fc   :  { %v543_v42 = vadd.f32 %v1438_v22, %v542_v40 }
 0x7fe   :  { %v547_v45 = vsel %vm546_vm14, %v1438_v22, %v543_v42 }
 0x7ff   :  { %v552_v46 = vsel %vm549_vm15, %v551_v44, %v547_v45 }
 0x800   :  { %v554_v47 = vmul.f32 2.0, %v552_v46  ;;  %v556_v57 = vmul.f32 %v552_v46, %v1709_v48 }
 0x802   :  { %v1356_v25 = vadd.f32 -1.0, %v554_v47 }
 0x804   :  { %558 = vrot.lane.b32.xlu2 %v1356_v25, %s1534_s26 }
 0x85e   :  { %v559_v49 = vpop.permute.xlu2 %558 }
 0x85f   :  { %v561_v51 = vmul.f32 %v559_v49, %v552_v46 }
 0x861   :  { %563 = vrot.lane.b32.xlu1 %v561_v51, %s1535_s27 }
 0x866   :  { %v597_v53 = vpop.permute.xlu0 %596 }
 0x867   :  { %v599_v36 = vmul.f32 %v597_v53, %v590_v19 }
 0x869   :  { %601 = vrot.lane.b32.xlu2 %v599_v36, %s1535_s27 }
 0x86e   :  { %v114_v2 = vpop.f32.mrf.mxu0 }
 0x86f   :  { %v115_v4 = vadd.f32 %v1573_v3, %v114_v2 }
 0x8c3   :  { %v602_v55 = vpop.permute.xlu2 %601 }
 0x8c4   :  { %v1746_v56 = vadd.f32 %v602_v55, %v594_v54 }
 0x8c6   :  { %1439 = vtanh.f32 %v1746_v56 }
 0x8cc   :  { %v1440_v43 = vpop.eup %1439 }
 0x8cd   :  { %607 = vrot.lane.b32.xlu1 %v1440_v43, %s1534_s26 }
 0x8d3   :  { %v564_v58 = vpop.permute.xlu1 %563 }
 0x8d4   :  { %v1751_v59 = vadd.f32 %v564_v58, %v556_v57 }
 0x8d6   :  { %1441 = vtanh.f32 %v1751_v59 }
 0x8dc   :  { %v1442_v60 = vpop.eup %1441 }
 0x8dd   :  { %569 = vrot.lane.b32.xlu0 %v1442_v60, %s1534_s26 }
 0x93f   :  { %v608_v61 = vpop.permute.xlu1 %607 }
 0x940   :  { %v610_v62 = vmul.f32 %v608_v61, %v590_v19 }
 0x942   :  { %612 = vrot.lane.b32.xlu2 %v610_v62, %s1535_s27 }
 0x94f   :  { %v570_v63 = vpop.permute.xlu0 %569 }
 0x950   :  { %v572_v48 = vmul.f32 %v570_v63, %v552_v46 }
 0x952   :  { %657 = vrot.lane.b32.xlu0 %v572_v48, %s1535_s27 }
 0x99c   :  { %v613_v0 = vpop.permute.xlu2 %612 }
 0x99d   :  { %1359 = vmatmul.msk.f32.vlgmr.msrb.gmra.mxu1 %vm168_vm5, %v613_v0  ;;  %1360 = vmatmul.msk.f32.vlgmr.msrb.gmra.mxu2 %vm168_vm5, %v613_v0 }
 0x99e   :  { %926 = vmatpush.msrb.mxu1 %v1582_v27  ;;  %946 = vmatpush.msrb.mxu2 %v1584_v28 }
 0x9a0   :  { %927 = vmatpush.msrb.mxu1 %v1593_v30  ;;  %947 = vmatpush.msrb.mxu2 %v1595_v31 }
 0x9a2   :  { %928 = vmatpush.msrb.mxu1 %v1603_v33  ;;  %948 = vmatpush.msrb.mxu2 %v1605_v34 }
 0x9a4   :  { %929 = vmatpush.msrb.mxu1 %v1619_v37  ;;  %949 = vmatpush.msrb.mxu2 %v1621_v38 }
 0x9c4   :  { %v658_v1 = vpop.permute.xlu0 %657 }
 0x9c5   :  { %1361 = vmatmul.msk.f32.vlgmr.msrb.gmra.mxu3 %vm168_vm5, %v658_v1 }
 0x9c6   :  { %971 = vmatpush.msrb.mxu3 %v1589_v29 }
 0x9c8   :  { %972 = vmatpush.msrb.mxu3 %v1600_v32 }
 0x9ca   :  { %973 = vmatpush.msrb.mxu3 %v1612_v35 }
 0x9cc   :  { %974 = vmatpush.msrb.mxu3 %v1628_v39 }
 0xa1a   :  { %v633_v5 = vpop.f32.mrf.mxu1 }
 0xa1b   :  { %v683_v6 = vadd.f32 %v633_v5, %v115_v4 }
 0xa1d   :  { %v1364_v7 = vmul.f32 -1.442695, %v683_v6  ;;  %v56_v6 = vld [vmem:[%s1918_s0 + $0x28] sm:$0xff] }
 0xa1e   :  { %1334 = vmatmul.msk.f32.gmra.mxu0 %vm60_vm0, %v56_v6  ;;  %v1497_v6 = vld [vmem:[#allocation2 + $0x38] sm:$0xff] }
 0xa1f   :  { %1443 = vpow2.f32 %v1364_v7 }
 0xa20   :  { %v653_v22 = vpop.f32.mrf.mxu2 }
 0xa25   :  { %v1444_v8 = vpop.eup %1443 }
 0xa26   :  { %v725_v9 = vadd.f32 1.0, %v1444_v8 }
 0xa28   :  { %1445 = vrcp.f32 %v725_v9  ;;  %v737_v13 = vand.u32 2147483648, %v725_v9  ;;  %v735_v15 = vand.u32 2147483647, %v725_v9  ;;  %vm731_vm2 = vweird.f32 %v725_v9 }
 0xa2a   :  { %v738_v17 = vor.u32 1.1754944e-38, %v737_v13  ;;  %vm736_vm4 = vcmp.eq.f32.partialorder %v735_v15, 8.507059e+37 }
 0xa2e   :  { %v1446_v10 = vpop.eup %1445 }
 0xa2f   :  { %v727_v11 = vmul.f32 %v1446_v10, %v725_v9  ;;  %vm732_vm1 = vweird.f32 %v1446_v10 }
 0xa30   :  { %vm733_vm3 = vmor %vm731_vm2, %vm732_vm1 }
 0xa31   :  { %v728_v12 = vsub.f32 1.0, %v727_v11 }
 0xa33   :  { %v729_v14 = vmul.f32 %v1446_v10, %v728_v12 }
 0xa35   :  { %v730_v16 = vadd.f32 %v1446_v10, %v729_v14 }
 0xa37   :  { %v734_v18 = vsel %vm733_vm3, %v1446_v10, %v730_v16 }
 0xa38   :  { %v739_v19 = vsel %vm736_vm4, %v738_v17, %v734_v18 }
 0xa39   :  { %v741_v20 = vmul.f32 2.0, %v739_v19  ;;  %v743_v61 = vmul.f32 %v739_v19, %v1746_v56 }
 0xa3b   :  { %v1365_v21 = vadd.f32 -1.0, %v741_v20 }
 0xa3d   :  { %745 = vrot.lane.b32.xlu2 %v1365_v21, %s1534_s26 }
 0xa48   :  { %v678_v23 = vpop.f32.mrf.mxu3 }
 0xa49   :  { %v681_v24 = vadd.f32 %v678_v23, %v653_v22 }
 0xa4b   :  { %v682_v26 = vadd.f32 %v1665_v50, %v681_v24 }
 0xa4d   :  { %v1362_v40 = vmul.f32 -1.442695, %v682_v26 }
 0xa4f   :  { %1447 = vpow2.f32 %v1362_v40 }
 0xa55   :  { %v1448_v41 = vpop.eup %1447 }
 0xa56   :  { %v687_v42 = vadd.f32 1.0, %v1448_v41 }
 0xa58   :  { %1449 = vrcp.f32 %v687_v42  ;;  %v699_v47 = vand.u32 2147483648, %v687_v42  ;;  %v697_v49 = vand.u32 2147483647, %v687_v42  ;;  %vm693_vm7 = vweird.f32 %v687_v42 }
 0xa5a   :  { %v700_v53 = vor.u32 1.1754944e-38, %v699_v47  ;;  %vm698_vm9 = vcmp.eq.f32.partialorder %v697_v49, 8.507059e+37 }
 0xa5e   :  { %v1450_v44 = vpop.eup %1449 }
 0xa5f   :  { %v689_v45 = vmul.f32 %v1450_v44, %v687_v42  ;;  %vm694_vm6 = vweird.f32 %v1450_v44 }
 0xa60   :  { %vm695_vm8 = vmor %vm693_vm7, %vm694_vm6 }
 0xa61   :  { %v690_v46 = vsub.f32 1.0, %v689_v45 }
 0xa63   :  { %v691_v25 = vmul.f32 %v1450_v44, %v690_v46 }
 0xa65   :  { %v692_v51 = vadd.f32 %v1450_v44, %v691_v25 }
 0xa67   :  { %v696_v36 = vsel %vm695_vm8, %v1450_v44, %v692_v51 }
 0xa68   :  { %v701_v54 = vsel %vm698_vm9, %v700_v53, %v696_v36 }
 0xa69   :  { %v703_v55 = vmul.f32 2.0, %v701_v54  ;;  %v705_v0 = vmul.f32 %v701_v54, %v1751_v59 }
 0xa6b   :  { %v1363_v43 = vadd.f32 -1.0, %v703_v55 }
 0xa6d   :  { %707 = vrot.lane.b32.xlu1 %v1363_v43, %s1534_s26 }
 0xa97   :  { %v746_v57 = vpop.permute.xlu2 %745 }
 0xa98   :  { %v748_v58 = vmul.f32 %v746_v57, %v739_v19 }
 0xa9a   :  { %750 = vrot.lane.b32.xlu1 %v748_v58, %s1535_s27 }
 0xadf   :  { %v708_v60 = vpop.permute.xlu1 %707 }
 0xae0   :  { %v710_v52 = vmul.f32 %v708_v60, %v701_v54 }
 0xae2   :  { %712 = vrot.lane.b32.xlu0 %v710_v52, %s1535_s27 }
 0xb0c   :  { %v751_v62 = vpop.permute.xlu1 %750 }
 0xb0d   :  { %v1783_v63 = vadd.f32 %v751_v62, %v743_v61 }
 0xb0f   :  { %1451 = vtanh.f32 %v1783_v63 }
 0xb15   :  { %v1452_v48 = vpop.eup %1451 }
 0xb16   :  { %756 = vrot.lane.b32.xlu0 %v1452_v48, %s1534_s26 }
 0xb54   :  { %v713_v1 = vpop.permute.xlu0 %712 }
 0xb55   :  { %v1788_v2 = vadd.f32 %v713_v1, %v705_v0 }
 0xb57   :  { %1453 = vtanh.f32 %v1788_v2 }
 0xb5d   :  { %v1454_v4 = vpop.eup %1453 }
 0xb5e   :  { %718 = vrot.lane.b32.xlu2 %v1454_v4, %s1534_s26  ;;  %v57_v4 = vld [vmem:[%s1918_s0 + $0x30] sm:$0xff] }
 0xb5f   :  { %1335 = vmatmul.msk.f32.gmra.mxu0 %vm60_vm0, %v57_v4 }
 0xb88   :  { %v757_v5 = vpop.permute.xlu0 %756 }
 0xb89   :  { %v759_v56 = vmul.f32 %v757_v5, %v739_v19 }
 0xb8b   :  { %761 = vrot.lane.b32.xlu1 %v759_v56, %s1535_s27 }
 0xbb8   :  { %v719_v7 = vpop.permute.xlu2 %718 }
 0xbb9   :  { %v721_v59 = vmul.f32 %v719_v7, %v701_v54  ;;  %v1498_v7 = vld [vmem:[%s1920_s2 + $0x28] sm:$0xff] }
 0xbbb   :  { %806 = vrot.lane.b32.xlu2 %v721_v59, %s1535_s27  ;;  %v1499_v59 = vld [vmem:[#allocation2 + $0x28] sm:$0xff] }
 0xbfd   :  { %v762_v8 = vpop.permute.xlu1 %761 }
 0xbfe   :  { %1366 = vmatmul.msk.f32.vlgmr.msra.gmra.mxu1 %vm168_vm5, %v762_v8  ;;  %1367 = vmatmul.msk.f32.vlgmr.msra.gmra.mxu2 %vm168_vm5, %v762_v8  ;;  %v1500_v8 = vld [vmem:[%s1920_s2 + $0x20] sm:$0xff] }
 0xbff   :  { %1075 = vmatpush.msra.mxu1 %v1582_v27  ;;  %1095 = vmatpush.msra.mxu2 %v1584_v28  ;;  %v117_v27 = vpop.f32.mrf.mxu0 }
 0xc00   :  { %v118_v28 = vadd.f32 %v1573_v3, %v117_v27  ;;  %v1502_v27 = vld [vmem:[%s1920_s2 + $0x18] sm:$0xff] }
 0xc01   :  { %1076 = vmatpush.msra.mxu1 %v1593_v30  ;;  %1096 = vmatpush.msra.mxu2 %v1595_v31 }
 0xc03   :  { %1077 = vmatpush.msra.mxu1 %v1603_v33  ;;  %1097 = vmatpush.msra.mxu2 %v1605_v34 }
 0xc05   :  { %1078 = vmatpush.msra.mxu1 %v1619_v37  ;;  %1098 = vmatpush.msra.mxu2 %v1621_v38 }
 0xc15   :  { %v807_v9 = vpop.permute.xlu2 %806 }
 0xc16   :  { %1368 = vmatmul.msk.f32.vlgmr.msra.gmra.mxu3 %vm168_vm5, %v807_v9  ;;  %v1501_v9 = vld [vmem:[#allocation2 + $0x18] sm:$0xff] }
 0xc17   :  { %1120 = vmatpush.msra.mxu3 %v1589_v29 }
 0xc19   :  { %1121 = vmatpush.msra.mxu3 %v1600_v32 }
 0xc1b   :  { %1122 = vmatpush.msra.mxu3 %v1612_v35 }
 0xc1d   :  { %1123 = vmatpush.msra.mxu3 %v1628_v39 }
 0xc7b   :  { %v782_v30 = vpop.f32.mrf.mxu1 }
 0xc7c   :  { %v832_v31 = vadd.f32 %v782_v30, %v118_v28  ;;  %v120_v30 = vpop.f32.mrf.mxu0 }
 0xc7e   :  { %v1371_v33 = vmul.f32 -1.442695, %v832_v31  ;;  %v1852_v31 = vld [vmem:[%s1920_s2 + $0x50] ss:$0 sm:$0xff] }
 0xc80   :  { %1455 = vpow2.f32 %v1371_v33  ;;  %v121_v33 = vadd.f32 %v1852_v31, %v120_v30 }
 0xc81   :  { %v802_v3 = vpop.f32.mrf.mxu2 }
 0xc86   :  { %v1456_v34 = vpop.eup %1455 }
 0xc87   :  { %v874_v37 = vadd.f32 1.0, %v1456_v34 }
 0xc89   :  { %1457 = vrcp.f32 %v874_v37  ;;  %v886_v29 = vand.u32 2147483648, %v874_v37  ;;  %v884_v32 = vand.u32 2147483647, %v874_v37  ;;  %vm880_vm11 = vweird.f32 %v874_v37 }
 0xc8b   :  { %v887_v14 = vor.u32 1.1754944e-38, %v886_v29  ;;  %vm885_vm13 = vcmp.eq.f32.partialorder %v884_v32, 8.507059e+37 }
 0xc8f   :  { %v1458_v10 = vpop.eup %1457 }
 0xc90   :  { %v876_v11 = vmul.f32 %v1458_v10, %v874_v37  ;;  %vm881_vm10 = vweird.f32 %v1458_v10 }
 0xc91   :  { %vm882_vm12 = vmor %vm880_vm11, %vm881_vm10 }
 0xc92   :  { %v877_v12 = vsub.f32 1.0, %v876_v11 }
 0xc94   :  { %v878_v13 = vmul.f32 %v1458_v10, %v877_v12 }
 0xc96   :  { %v879_v35 = vadd.f32 %v1458_v10, %v878_v13 }
 0xc98   :  { %v883_v15 = vsel %vm882_vm12, %v1458_v10, %v879_v35 }
 0xc99   :  { %v827_v16 = vpop.f32.mrf.mxu3  ;;  %v888_v17 = vsel %vm885_vm13, %v887_v14, %v883_v15 }
 0xc9a   :  { %v830_v18 = vadd.f32 %v827_v16, %v802_v3  ;;  %v890_v19 = vmul.f32 2.0, %v888_v17  ;;  %v892_v57 = vmul.f32 %v888_v17, %v1783_v63 }
 0xc9c   :  { %v831_v20 = vadd.f32 %v1665_v50, %v830_v18  ;;  %v1372_v21 = vadd.f32 -1.0, %v890_v19 }
 0xc9e   :  { %v1369_v22 = vmul.f32 -1.442695, %v831_v20  ;;  %894 = vrot.lane.b32.xlu1 %v1372_v21, %s1534_s26 }
 0xca0   :  { %1459 = vpow2.f32 %v1369_v22 }
 0xca6   :  { %v1460_v23 = vpop.eup %1459 }
 0xca7   :  { %v836_v24 = vadd.f32 1.0, %v1460_v23 }
 0xca9   :  { %1461 = vrcp.f32 %v836_v24  ;;  %v848_v42 = vand.u32 2147483648, %v836_v24  ;;  %v846_v45 = vand.u32 2147483647, %v836_v24  ;;  %vm842_vm15 = vweird.f32 %v836_v24 }
 0xcab   :  { %v849_v47 = vor.u32 1.1754944e-38, %v848_v42  ;;  %vm847_vm2 = vcmp.eq.f32.partialorder %v846_v45, 8.507059e+37 }
 0xcaf   :  { %v1462_v26 = vpop.eup %1461 }
 0xcb0   :  { %v838_v40 = vmul.f32 %v1462_v26, %v836_v24  ;;  %vm843_vm14 = vweird.f32 %v1462_v26 }
 0xcb1   :  { %vm844_vm1 = vmor %vm842_vm15, %vm843_vm14 }
 0xcb2   :  { %v839_v41 = vsub.f32 1.0, %v838_v40 }
 0xcb4   :  { %v840_v44 = vmul.f32 %v1462_v26, %v839_v41 }
 0xcb6   :  { %v841_v46 = vadd.f32 %v1462_v26, %v840_v44 }
 0xcb8   :  { %v845_v25 = vsel %vm844_vm1, %v1462_v26, %v841_v46 }
 0xcb9   :  { %v850_v49 = vsel %vm847_vm2, %v849_v47, %v845_v25 }
 0xcba   :  { %v852_v51 = vmul.f32 2.0, %v850_v49  ;;  %v854_v52 = vmul.f32 %v850_v49, %v1788_v2 }
 0xcbc   :  { %v1370_v53 = vadd.f32 -1.0, %v852_v51 }
 0xcbe   :  { %856 = vrot.lane.b32.xlu0 %v1370_v53, %s1534_s26 }
 0xd10   :  { %v895_v36 = vpop.permute.xlu1 %894 }
 0xd11   :  { %v897_v54 = vmul.f32 %v895_v36, %v888_v17 }
 0xd13   :  { %899 = vrot.lane.b32.xlu0 %v897_v54, %s1535_s27 }
 0xd30   :  { %v857_v55 = vpop.permute.xlu0 %856 }
 0xd31   :  { %v859_v43 = vmul.f32 %v857_v55, %v850_v49 }
 0xd33   :  { %861 = vrot.lane.b32.xlu2 %v859_v43, %s1535_s27 }
 0xd85   :  { %v900_v58 = vpop.permute.xlu0 %899 }
 0xd86   :  { %v1820_v60 = vadd.f32 %v900_v58, %v892_v57 }
 0xd88   :  { %1463 = vtanh.f32 %v1820_v60 }
 0xd8d   :  { %v862_v61 = vpop.permute.xlu2 %861 }
 0xd8e   :  { %v1464_v62 = vpop.eup %1463  ;;  %v1824_v48 = vadd.f32 %v862_v61, %v854_v52 }
 0xd8f   :  { %905 = vrot.lane.b32.xlu2 %v1464_v62, %s1534_s26 }
 0xd90   :  { %1465 = vtanh.f32 %v1824_v48 }
 0xd96   :  { %v1466_v0 = vpop.eup %1465 }
 0xd97   :  { %867 = vrot.lane.b32.xlu1 %v1466_v0, %s1534_s26 }
 0xde9   :  { %v906_v1 = vpop.permute.xlu2 %905 }
 0xdea   :  { %v908_v63 = vmul.f32 %v906_v1, %v888_v17 }
 0xdec   :  { %910 = vrot.lane.b32.xlu0 %v908_v63, %s1535_s27 }
 0xe09   :  { %v868_v2 = vpop.permute.xlu1 %867 }
 0xe0a   :  { %v870_v5 = vmul.f32 %v868_v2, %v850_v49  ;;  %v58_v2 = vld [vmem:[%s1918_s0 + $0x38] sm:$0xff] }
 0xe0b   :  { %1336 = vmatmul.msk.f32.gmra.mxu0 %vm60_vm0, %v58_v2 }
 0xe0c   :  { %955 = vrot.lane.b32.xlu1 %v870_v5, %s1535_s27 }
 0xe5e   :  { %v911_v56 = vpop.permute.xlu0 %910 }
 0xe5f   :  { %1373 = vmatmul.msk.f32.vlgmr.msrb.gmra.mxu1 %vm168_vm5, %v911_v56  ;;  %1374 = vmatmul.msk.f32.vlgmr.msrb.gmra.mxu2 %vm168_vm5, %v911_v56 }
 0xe60   :  { %1224 = vmatpush.msrb.mxu1 %v1497_v6  ;;  %1249 = vmatpush.msrb.mxu2 %v1498_v7 }
 0xe62   :  { %1225 = vmatpush.msrb.mxu1 %v1499_v59  ;;  %1250 = vmatpush.msrb.mxu2 %v1500_v8 }
 0xe64   :  { %1226 = vmatpush.msrb.mxu1 %v1501_v9  ;;  %1251 = vmatpush.msrb.mxu2 %v1502_v27 }
 0xe66   :  { %1227 = vmatpush.msrb.mxu1 %v1621_v38  ;;  %1252 = vmatpush.msrb.mxu2 %v1628_v39 }
 0xe7e   :  { %v956_v28 = vpop.permute.xlu1 %955 }
 0xe7f   :  { %1375 = vmatmul.msk.f32.vlgmr.msrb.gmra.mxu3 %vm168_vm5, %v956_v28 }
 0xe88   :  { %v123_v7 = vpop.f32.mrf.mxu0 }
 0xe89   :  { %v124_v59 = vadd.f32 %v1852_v31, %v123_v7 }
 0xedc   :  { %v931_v34 = vpop.f32.mrf.mxu1 }
 0xedd   :  { %v981_v37 = vadd.f32 %v931_v34, %v121_v33 }
 0xedf   :  { %v1378_v10 = vmul.f32 -1.442695, %v981_v37 }
 0xee1   :  { %1467 = vpow2.f32 %v1378_v10 }
 0xee2   :  { %v951_v19 = vpop.f32.mrf.mxu2 }
 0xee7   :  { %v1468_v11 = vpop.eup %1467 }
 0xee8   :  { %v1023_v12 = vadd.f32 1.0, %v1468_v11 }
 0xeea   :  { %1469 = vrcp.f32 %v1023_v12  ;;  %v1035_v13 = vand.u32 2147483648, %v1023_v12  ;;  %v1033_v35 = vand.u32 2147483647, %v1023_v12  ;;  %vm1029_vm4 = vweird.f32 %v1023_v12 }
 0xeec   :  { %v1036_v15 = vor.u32 1.1754944e-38, %v1035_v13  ;;  %vm1034_vm7 = vcmp.eq.f32.partialorder %v1033_v35, 8.507059e+37 }
 0xef0   :  { %v1470_v38 = vpop.eup %1469 }
 0xef1   :  { %v1025_v39 = vmul.f32 %v1470_v38, %v1023_v12  ;;  %vm1030_vm3 = vweird.f32 %v1470_v38 }
 0xef2   :  { %vm1031_vm6 = vmor %vm1029_vm4, %vm1030_vm3 }
 0xef3   :  { %v1026_v29 = vsub.f32 1.0, %v1025_v39 }
 0xef5   :  { %v1027_v32 = vmul.f32 %v1470_v38, %v1026_v29 }
 0xef7   :  { %v1028_v14 = vadd.f32 %v1470_v38, %v1027_v32 }
 0xef9   :  { %v1032_v3 = vsel %vm1031_vm6, %v1470_v38, %v1028_v14 }
 0xefa   :  { %v1037_v16 = vsel %vm1034_vm7, %v1036_v15, %v1032_v3  ;;  %v1504_v3 = vld [vmem:[%s1920_s2 + $0x51] ss:$0 sm:$0xff] }
 0xefb   :  { %v1039_v17 = vmul.f32 2.0, %v1037_v16  ;;  %v1041_v57 = vmul.f32 %v1037_v16, %v1820_v60 }
 0xefd   :  { %v1379_v18 = vadd.f32 -1.0, %v1039_v17 }
 0xeff   :  { %1043 = vrot.lane.b32.xlu0 %v1379_v18, %s1534_s26 }
 0xf02   :  { %v976_v20 = vpop.f32.mrf.mxu3 }
 0xf03   :  { %v979_v21 = vadd.f32 %v976_v20, %v951_v19 }
 0xf05   :  { %v980_v22 = vadd.f32 %v1665_v50, %v979_v21 }
 0xf07   :  { %v1376_v23 = vmul.f32 -1.442695, %v980_v22 }
 0xf09   :  { %1471 = vpow2.f32 %v1376_v23 }
 0xf0f   :  { %v1472_v24 = vpop.eup %1471 }
 0xf10   :  { %v985_v26 = vadd.f32 1.0, %v1472_v24 }
 0xf12   :  { %1473 = vrcp.f32 %v985_v26  ;;  %v997_v44 = vand.u32 2147483648, %v985_v26  ;;  %v995_v46 = vand.u32 2147483647, %v985_v26  ;;  %vm991_vm9 = vweird.f32 %v985_v26 }
 0xf14   :  { %v998_v25 = vor.u32 1.1754944e-38, %v997_v44  ;;  %vm996_vm11 = vcmp.eq.f32.partialorder %v995_v46, 8.507059e+37 }
 0xf18   :  { %v1474_v40 = vpop.eup %1473 }
 0xf19   :  { %v987_v41 = vmul.f32 %v1474_v40, %v985_v26  ;;  %vm992_vm8 = vweird.f32 %v1474_v40 }
 0xf1a   :  { %vm993_vm10 = vmor %vm991_vm9, %vm992_vm8 }
 0xf1b   :  { %v988_v42 = vsub.f32 1.0, %v987_v41 }
 0xf1d   :  { %v989_v45 = vmul.f32 %v1474_v40, %v988_v42 }
 0xf1f   :  { %v990_v47 = vadd.f32 %v1474_v40, %v989_v45 }
 0xf21   :  { %v994_v49 = vsel %vm993_vm10, %v1474_v40, %v990_v47 }
 0xf22   :  { %v999_v51 = vsel %vm996_vm11, %v998_v25, %v994_v49 }
 0xf23   :  { %v1001_v50 = vmul.f32 2.0, %v999_v51  ;;  %v1003_v62 = vmul.f32 %v999_v51, %v1824_v48 }
 0xf25   :  { %v1377_v53 = vadd.f32 -1.0, %v1001_v50 }
 0xf27   :  { %1005 = vrot.lane.b32.xlu2 %v1377_v53, %s1534_s26 }
 0xf71   :  { %v1044_v36 = vpop.permute.xlu0 %1043 }
 0xf72   :  { %v1046_v54 = vmul.f32 %v1044_v36, %v1037_v16 }
 0xf74   :  { %1048 = vrot.lane.b32.xlu2 %v1046_v54, %s1535_s27 }
 0xf81   :  { %v1006_v55 = vpop.permute.xlu2 %1005 }
 0xf82   :  { %v1008_v43 = vmul.f32 %v1006_v55, %v999_v51 }
 0xf84   :  { %1010 = vrot.lane.b32.xlu1 %v1008_v43, %s1535_s27 }
 0xfce   :  { %v1049_v58 = vpop.permute.xlu2 %1048 }
 0xfcf   :  { %v1861_v52 = vadd.f32 %v1049_v58, %v1041_v57 }
 0xfd1   :  { %1475 = vtanh.f32 %v1861_v52 }
 0xfd7   :  { %v1476_v61 = vpop.eup %1475 }
 0xfd8   :  { %1054 = vrot.lane.b32.xlu1 %v1476_v61, %s1534_s26 }
 0xff6   :  { %v1011_v0 = vpop.permute.xlu1 %1010 }
 0xff7   :  { %v1866_v1 = vadd.f32 %v1011_v0, %v1003_v62 }
 0xff9   :  { %1477 = vtanh.f32 %v1866_v1 }
 0xfff   :  { %v1478_v63 = vpop.eup %1477 }
0x1000   :  { %1016 = vrot.lane.b32.xlu0 %v1478_v63, %s1534_s26 }
0x104a   :  { %v1055_v4 = vpop.permute.xlu1 %1054 }
0x104b   :  { %v1057_v60 = vmul.f32 %v1055_v4, %v1037_v16 }
0x104d   :  { %1059 = vrot.lane.b32.xlu2 %v1057_v60, %s1535_s27 }
0x1072   :  { %v1017_v5 = vpop.permute.xlu0 %1016 }
0x1073   :  { %v1019_v48 = vmul.f32 %v1017_v5, %v999_v51 }
0x1075   :  { %1104 = vrot.lane.b32.xlu0 %v1019_v48, %s1535_s27 }
0x10a7   :  { %v1060_v56 = vpop.permute.xlu2 %1059 }
0x10a8   :  { %1380 = vmatmul.msk.f32.vlgmr.msra.gmra.mxu1 %vm168_vm5, %v1060_v56  ;;  %1381 = vmatmul.msk.f32.vlgmr.msra.gmra.mxu2 %vm168_vm5, %v1060_v56 }
0x10e7   :  { %v1105_v6 = vpop.permute.xlu0 %1104 }
0x10e8   :  { %1382 = vmatmul.msk.f32.vlgmr.msra.gmra.mxu3 %vm168_vm5, %v1105_v6 }
0x1125   :  { %v1080_v8 = vpop.f32.mrf.mxu1 }
0x1126   :  { %v1130_v9 = vadd.f32 %v1080_v8, %v124_v59 }
0x1128   :  { %v1385_v27 = vmul.f32 -1.442695, %v1130_v9 }
0x112a   :  { %1479 = vpow2.f32 %v1385_v27 }
0x112b   :  { %v1100_v35 = vpop.f32.mrf.mxu2 }
0x1130   :  { %v1480_v28 = vpop.eup %1479 }
0x1131   :  { %v1172_v30 = vadd.f32 1.0, %v1480_v28 }
0x1133   :  { %1481 = vrcp.f32 %v1172_v30  ;;  %v1184_v10 = vand.u32 2147483648, %v1172_v30  ;;  %v1182_v12 = vand.u32 2147483647, %v1172_v30  ;;  %vm1178_vm12 = vweird.f32 %v1172_v30 }
0x1135   :  { %v1185_v39 = vor.u32 1.1754944e-38, %v1184_v10  ;;  %vm1183_vm14 = vcmp.eq.f32.partialorder %v1182_v12, 8.507059e+37 }
0x1139   :  { %v1482_v33 = vpop.eup %1481 }
0x113a   :  { %v1174_v34 = vmul.f32 %v1482_v33, %v1172_v30  ;;  %vm1179_vm0 = vweird.f32 %v1482_v33 }
0x113b   :  { %vm1180_vm13 = vmor %vm1178_vm12, %vm1179_vm0 }
0x113c   :  { %v1175_v37 = vsub.f32 1.0, %v1174_v34 }
0x113e   :  { %v1176_v11 = vmul.f32 %v1482_v33, %v1175_v37 }
0x1140   :  { %v1177_v38 = vadd.f32 %v1482_v33, %v1176_v11 }
0x1142   :  { %v1181_v29 = vsel %vm1180_vm13, %v1482_v33, %v1177_v38 }
0x1143   :  { %v1186_v31 = vsel %vm1183_vm14, %v1185_v39, %v1181_v29 }
0x1144   :  { %v1188_v13 = vmul.f32 2.0, %v1186_v31  ;;  %v1190_v50 = vmul.f32 %v1186_v31, %v1861_v52 }
0x1146   :  { %v1386_v32 = vadd.f32 -1.0, %v1188_v13 }
0x1148   :  { %1192 = vrot.lane.b32.xlu2 %v1386_v32, %s1534_s26  ;;  %v39_v32 = vld [vmem:[%s1920_s2 + $0x48] sm:$0xff] }
0x1149   :  { %1315 = vmatpush.msrb.mxu3 %v39_v32 }
0x116b   :  { %v1125_v14 = vpop.f32.mrf.mxu3 }
0x116c   :  { %v1128_v15 = vadd.f32 %v1125_v14, %v1100_v35  ;;  %v38_v35 = vld [vmem:[%s1920_s2 + $0x40] sm:$0xff]  ;;  %v37_v14 = vld [vmem:[%s1920_s2 + $0x38] sm:$0xff] }
0x116d   :  { %1316 = vmatpush.msrb.mxu3 %v38_v35 }
0x116e   :  { %v1129_v16 = vadd.f32 %v1504_v3, %v1128_v15  ;;  %v36_v15 = vld [vmem:[%s1920_s2 + $0x30] sm:$0xff] }
0x116f   :  { %1317 = vmatpush.msrb.mxu3 %v37_v14 }
0x1170   :  { %v1383_v17 = vmul.f32 -1.442695, %v1129_v16 }
0x1171   :  { %1318 = vmatpush.msrb.mxu3 %v36_v15 }
0x1172   :  { %1483 = vpow2.f32 %v1383_v17 }
0x1178   :  { %v1484_v18 = vpop.eup %1483 }
0x1179   :  { %v1134_v19 = vadd.f32 1.0, %v1484_v18  ;;  %v1400_v18 = vld [vmem:[%s1920_s2 + $0x52] ss:$0 sm:$0xff] }
0x117b   :  { %1485 = vrcp.f32 %v1134_v19  ;;  %v1146_v23 = vand.u32 2147483648, %v1134_v19  ;;  %v1144_v26 = vand.u32 2147483647, %v1134_v19  ;;  %vm1140_vm1 = vweird.f32 %v1134_v19 }
0x117d   :  { %v1147_v41 = vor.u32 1.1754944e-38, %v1146_v23  ;;  %vm1145_vm3 = vcmp.eq.f32.partialorder %v1144_v26, 8.507059e+37 }
0x1181   :  { %v1486_v20 = vpop.eup %1485 }
0x1182   :  { %v1136_v21 = vmul.f32 %v1486_v20, %v1134_v19  ;;  %vm1141_vm15 = vweird.f32 %v1486_v20 }
0x1183   :  { %vm1142_vm2 = vmor %vm1140_vm1, %vm1141_vm15 }
0x1184   :  { %v1137_v22 = vsub.f32 1.0, %v1136_v21 }
0x1186   :  { %v1138_v24 = vmul.f32 %v1486_v20, %v1137_v22 }
0x1188   :  { %v1139_v40 = vadd.f32 %v1486_v20, %v1138_v24 }
0x118a   :  { %v1143_v42 = vsel %vm1142_vm2, %v1486_v20, %v1139_v40 }
0x118b   :  { %v1148_v44 = vsel %vm1145_vm3, %v1147_v41, %v1143_v42 }
0x118c   :  { %v1150_v45 = vmul.f32 2.0, %v1148_v44  ;;  %v1152_v55 = vmul.f32 %v1148_v44, %v1866_v1 }
0x118e   :  { %v1384_v46 = vadd.f32 -1.0, %v1150_v45 }
0x1190   :  { %1154 = vrot.lane.b32.xlu1 %v1384_v46, %s1534_s26 }
0x11a2   :  { %v1193_v47 = vpop.permute.xlu2 %1192 }
0x11a3   :  { %v1195_v25 = vmul.f32 %v1193_v47, %v1186_v31 }
0x11a5   :  { %1197 = vrot.lane.b32.xlu1 %v1195_v25, %s1535_s27 }
0x1202   :  { %v1155_v49 = vpop.permute.xlu1 %1154 }
0x1203   :  { %v1157_v51 = vmul.f32 %v1155_v49, %v1148_v44 }
0x1205   :  { %1159 = vrot.lane.b32.xlu0 %v1157_v51, %s1535_s27 }
0x1217   :  { %v1198_v53 = vpop.permute.xlu1 %1197 }
0x1218   :  { %v1200_v36 = vadd.f32 %v1198_v53, %v1190_v50 }
0x121a   :  { %1487 = vtanh.f32 %v1200_v36 }
0x1220   :  { %v1488_v54 = vpop.eup %1487 }
0x1221   :  { %1203 = vrot.lane.b32.xlu0 %v1488_v54, %s1534_s26 }
0x1277   :  { %v1160_v43 = vpop.permute.xlu0 %1159 }
0x1278   :  { %v1162_v57 = vadd.f32 %v1160_v43, %v1152_v55 }
0x127a   :  { %1489 = vtanh.f32 %v1162_v57 }
0x1280   :  { %v1490_v58 = vpop.eup %1489 }
0x1281   :  { %1165 = vrot.lane.b32.xlu2 %v1490_v58, %s1534_s26 }
0x1293   :  { %v1204_v61 = vpop.permute.xlu0 %1203 }
0x1294   :  { %v1206_v62 = vmul.f32 %v1204_v61, %v1186_v31 }
0x1296   :  { %1208 = vrot.lane.b32.xlu2 %v1206_v62, %s1535_s27 }
0x12db   :  { %v1166_v0 = vpop.permute.xlu2 %1165 }
0x12dc   :  { %v1168_v52 = vmul.f32 %v1166_v0, %v1148_v44 }
0x12de   :  { %1233 = vrot.lane.b32.xlu1 %v1168_v52, %s1535_s27 }
0x12f0   :  { %v1209_v63 = vpop.permute.xlu2 %1208 }
0x12f1   :  { %1387 = vmatmul.msk.f32.vlgmr.msrb.gmra.mxu1 %vm168_vm5, %v1209_v63 }
0x1350   :  { %v1234_v4 = vpop.permute.xlu1 %1233 }
0x1351   :  { %1388 = vmatmul.msk.f32.vlgmr.msrb.gmra.mxu2 %vm168_vm5, %v1234_v4 }
0x136e   :  { %v1229_v1 = vpop.f32.mrf.mxu1 }
0x13d4   :  { %v1254_v60 = vpop.f32.mrf.mxu2 }
0x13d5   :  { %v1257_v2 = vadd.f32 %v1254_v60, %v1229_v1 }
0x13d7   :  { %v1258_v5 = vadd.f32 %v1504_v3, %v1257_v2 }
0x13d9   :  { %v1389_v48 = vmul.f32 -1.442695, %v1258_v5 }
0x13db   :  { %1491 = vpow2.f32 %v1389_v48 }
0x13e1   :  { %v1492_v56 = vpop.eup %1491 }
0x13e2   :  { %v1262_v6 = vadd.f32 1.0, %v1492_v56 }
0x13e4   :  { %1493 = vrcp.f32 %v1262_v6  ;;  %v1274_v9 = vand.u32 2147483648, %v1262_v6  ;;  %v1272_v28 = vand.u32 2147483647, %v1262_v6  ;;  %vm1268_vm6 = vweird.f32 %v1262_v6 }
0x13e6   :  { %v1275_v33 = vor.u32 1.1754944e-38, %v1274_v9  ;;  %vm1273_vm8 = vcmp.eq.f32.partialorder %v1272_v28, 8.507059e+37 }
0x13ea   :  { %v1494_v7 = vpop.eup %1493 }
0x13eb   :  { %v1264_v59 = vmul.f32 %v1494_v7, %v1262_v6  ;;  %vm1269_vm4 = vweird.f32 %v1494_v7 }
0x13ec   :  { %vm1270_vm7 = vmor %vm1268_vm6, %vm1269_vm4 }
0x13ed   :  { %v1265_v8 = vsub.f32 1.0, %v1264_v59 }
0x13ef   :  { %v1266_v27 = vmul.f32 %v1494_v7, %v1265_v8 }
0x13f1   :  { %v1267_v30 = vadd.f32 %v1494_v7, %v1266_v27 }
0x13f3   :  { %v1271_v34 = vsel %vm1270_vm7, %v1494_v7, %v1267_v30 }
0x13f4   :  { %v1276_v37 = vsel %vm1273_vm8, %v1275_v33, %v1271_v34 }
0x13f5   :  { %v1278_v10 = vmul.f32 2.0, %v1276_v37  ;;  %v1280_v39 = vmul.f32 %v1276_v37, %v1162_v57 }
0x13f7   :  { %v1390_v11 = vadd.f32 -1.0, %v1278_v10 }
0x13f9   :  { %1282 = vrot.lane.b32.xlu0 %v1390_v11, %s1534_s26 }
0x146b   :  { %v1283_v12 = vpop.permute.xlu0 %1282 }
0x146c   :  { %v1285_v38 = vmul.f32 %v1283_v12, %v1276_v37 }
0x146e   :  { %1287 = vrot.lane.b32.xlu1 %v1285_v38, %s1535_s27 }
0x14e0   :  { %v1288_v29 = vpop.permute.xlu1 %1287 }
0x14e1   :  { %v1290_v31 = vadd.f32 %v1288_v29, %v1280_v39 }
0x14e3   :  { %1495 = vtanh.f32 %v1290_v31 }
0x14e9   :  { %v1496_v13 = vpop.eup %1495 }
0x14ea   :  { %1293 = vrot.lane.b32.xlu2 %v1496_v13, %s1534_s26 }
0x1544   :  { %v1294_v3 = vpop.permute.xlu2 %1293 }
0x1545   :  { %v1296_v16 = vmul.f32 %v1294_v3, %v1276_v37 }
0x1547   :  { %1299 = vrot.lane.b32.xlu0 %v1296_v16, %s1535_s27 }
0x15b9   :  { %v1300_v17 = vpop.permute.xlu0 %1299 }
0x15ba   :  { %1391 = vmatmul.msk.f32.vlgmr.msrb.gmra.mxu3 %vm168_vm5, %v1300_v17 }
0x163d   :  { %v1320_v19 = vpop.f32.mrf.mxu3 }
0x163e   :  { %v1321_v20 = vadd.f32 %v1400_v18, %v1320_v19 }
0x1640   :  { %1323 = vst [vmem:[%s1921_s3] sm:$0xff] %v1321_v20 }
0x1641   :  { %1328 = vsyncpa [#allocation3], 1 }

</bundles_post_ra>
